<compile_context>
chip_gen: v7x
topology: tpu7x:2x2x1
jax: 0.10.0
libtpu: 0.0.40
codegen_flags: <defaults>
</compile_context>

<pallas_src>
import functools

import numpy as np
import jax
import jax.numpy as jnp
from jax.experimental import pallas as pl
from jax.experimental.pallas import tpu as pltpu


def stgcn_kernel(T, N,
                 x_ref, a_ref,
                 cw0_ref, v0_ref, gw0_ref,
                 cw1_ref, v1_ref, gw1_ref,
                 ow_ref, ob_ref,
                 out_ref):
    TN = T * N
    inv_t = 1.0 / T                       # compile-time constant
    a_blk = a_ref[...]                    # [T*N, T*N] block-diag normalized adjacency

    def stgcn_layer(hf, cw_ref, v_ref, gw_ref):
        """hf: [T*N, Cin] flat time-major node features -> [T*N, Cout]."""
        vec = v_ref[...]                  # [4, Cout]: conv_b, IN gamma, IN beta, gcn_b
        conv_b, gamma, beta, gcn_b = vec[0:1], vec[1:2], vec[2:3], vec[3:4]

        cw = cw_ref[...]                  # [Cin, 3*Cout]: taps packed along lanes
        c = cw.shape[1] // 3

        # ---- temporal Conv1d(k=3, pad=1): one fused matmul for all 3 taps ----
        p = jnp.dot(hf, cw, preferred_element_type=jnp.float32)   # [T*N, 3*Cout]
        p0 = p[:, :c]                     # tap 0: contributes x[t-1] to y[t]
        p1 = p[:, c:2 * c]                # tap 1: center
        p2 = p[:, 2 * c:]                 # tap 2: contributes x[t+1] to y[t]

        zpad = jnp.zeros((N, c), jnp.float32)
        y = (p1 + conv_b
             + jnp.concatenate([zpad, p0[:TN - N, :]], axis=0)    # shift down by N rows
             + jnp.concatenate([p2[N:, :], zpad], axis=0))        # shift up by N rows
        y = jnp.clip(y, -10.0, 10.0)

        # ---- InstanceNorm1d over time per (node, channel): biased var, eps=1e-5 ----
        y3 = y.reshape(T, N, c)                                   # tile-aligned (N%8==0)
        mean = jnp.sum(y3, axis=0) * inv_t                        # [N, Cout]
        d = y3 - mean[None]                                       # [T, N, Cout]
        var = jnp.sum(d * d, axis=0) * inv_t                      # [N, Cout]
        scale = gamma * jax.lax.rsqrt(var + 1e-5)                 # [N, Cout]
        z = jnp.maximum(d * scale[None] + beta, 0.0)              # ReLU
        zf = z.reshape(TN, c)

        # ---- spatial GCNConv: X@W and block-diag A applied as single matmuls ----
        zw = jnp.dot(zf, gw_ref[...], preferred_element_type=jnp.float32)
        o = jnp.dot(a_blk, zw, preferred_element_type=jnp.float32) + gcn_b
        return jnp.minimum(jnp.maximum(o, 0.0), 10.0)             # relu, then clamp@10

    xf = x_ref[...]                                               # [T*N, Fin] pre-flattened
    h = stgcn_layer(xf, cw0_ref, v0_ref, gw0_ref)                 # input layer  Fin -> H
    h = stgcn_layer(h, cw1_ref, v1_ref, gw1_ref)                  # hidden layer H   -> H

    # ---- mean over time, then the output Linear (mean and Linear commute) ----
    hm = jnp.sum(h.reshape(T, N, h.shape[-1]), axis=0) * inv_t    # [N, H]
    out_ref[...] = (jnp.dot(hm, ow_ref[...], preferred_element_type=jnp.float32)
                    + ob_ref[...]).astype(out_ref.dtype)


def base_stgcn_forward(x_flat, a_blk, params, num_nodes):
    """x_flat: [B, T*N, Fin] f32, a_blk: [B, T*N, T*N] f32 -> [B, N, OUT] f32."""
    B, TN, Fin = x_flat.shape
    N = num_nodes
    T = TN // N
    H = params["gw0"].shape[0]
    OUT = params["ow"].shape[1]

    def shared(shape):                    # parameters: same block for every batch step
        return pl.BlockSpec(shape, lambda b: (0,) * len(shape))

    grid_spec = pltpu.PrefetchScalarGridSpec(
        num_scalar_prefetch=0,
        grid=(B,),
        in_specs=[
            pl.BlockSpec((None, TN, Fin), lambda b: (b, 0, 0)),   # node features
            pl.BlockSpec((None, TN, TN), lambda b: (b, 0, 0)),    # block-diag adjacency
            shared((Fin, 3 * H)), shared((4, H)), shared((H, H)),  # layer 0 params
            shared((H, 3 * H)), shared((4, H)), shared((H, H)),    # layer 1 params
            shared((H, OUT)), shared((1, OUT)),                     # output Linear
        ],
        out_specs=pl.BlockSpec((None, N, OUT), lambda b: (b, 0, 0)),
    )
    return pl.pallas_call(
        functools.partial(stgcn_kernel, T, N),
        out_shape=jax.ShapeDtypeStruct((B, N, OUT), jnp.float32),
        grid_spec=grid_spec,
        compiler_params=pltpu.CompilerParams(
            dimension_semantics=("parallel",)),
    )(x_flat, a_blk,
      params["cw0"], params["vec0"], params["gw0"],
      params["cw1"], params["vec1"], params["gw1"],
      params["ow"], params["ob"])


def build_normalized_adjacency(edge_src, edge_dst, edge_w, num_nodes):
    """Dense equivalent of PyG gcn_norm with add_self_loops=True (host-side glue).

    Exact for graphs with no pre-existing self-loop edges (fill value 1.0).
    """
    a = jnp.zeros((num_nodes, num_nodes), jnp.float32)
    a = a.at[edge_dst, edge_src].add(edge_w)               # message src -> dst
    a = a + jnp.eye(num_nodes, dtype=jnp.float32)          # self loops
    deg = a.sum(axis=1)
    dinv = jnp.where(deg > 0, 1.0 / jnp.sqrt(deg), 0.0)
    return dinv[:, None] * a * dinv[None, :]


def reference_forward(x_seq, a_hat, params):
    """Pure-JAX mirror of the PyTorch forward for ONE sequence ([T,N,Fin])."""
    T, N, _ = x_seq.shape

    def layer(h_seq, cw, vec, gw):
        c = cw.shape[1] // 3
        w0, w1, w2 = cw[:, :c], cw[:, c:2 * c], cw[:, 2 * c:]
        conv_b, gamma, beta, gcn_b = vec[0], vec[1], vec[2], vec[3]
        pad = jnp.zeros((1, N, h_seq.shape[-1]), jnp.float32)
        hp = jnp.concatenate([pad, h_seq, pad], axis=0)
        y = jnp.stack([hp[t] @ w0 + hp[t + 1] @ w1 + hp[t + 2] @ w2 + conv_b
                       for t in range(T)], axis=0)
        y = jnp.clip(y, -10.0, 10.0)
        mean = y.mean(axis=0, keepdims=True)
        var = ((y - mean) ** 2).mean(axis=0, keepdims=True)  # biased, like InstanceNorm
        y = (y - mean) / jnp.sqrt(var + 1e-5) * gamma + beta
        y = jax.nn.relu(y)
        outs = []
        for t in range(T):
            o = a_hat @ (y[t] @ gw) + gcn_b
            outs.append(jnp.clip(jax.nn.relu(o), -10.0, 10.0))
        return jnp.stack(outs, axis=0)

    h = layer(x_seq, params["cw0"], params["vec0"], params["gw0"])
    h = layer(h, params["cw1"], params["vec1"], params["gw1"])
    outs = jnp.stack([h[t] @ params["ow"] + params["ob"] for t in range(T)], axis=0)
    return outs.mean(axis=0)


if __name__ == "__main__":
    # Small shapes consistent with the module (num_nodes=16, in=4, hidden=32,
    # out=8, num_layers=3, sequence length 8), batch of 2 independent sequences.
    B, T, N, FIN, HID, OUT = 2, 8, 16, 4, 32, 8
    E = 48

    key = jax.random.PRNGKey(0)
    ks = jax.random.split(key, 20)
    s = 0.1

    params = {
        # Conv1d weights packed tap-major along lanes: cw[:, k*C:(k+1)*C] = W_conv[:, :, k].T
        "cw0": s * jax.random.normal(ks[0], (FIN, 3 * HID), jnp.float32),
        "cw1": s * jax.random.normal(ks[1], (HID, 3 * HID), jnp.float32),
        # packed per-layer vectors: rows = [conv bias, IN gamma, IN beta, GCN bias]
        "vec0": jnp.stack([
            s * jax.random.normal(ks[2], (HID,), jnp.float32),
            1.0 + s * jax.random.normal(ks[3], (HID,), jnp.float32),
            s * jax.random.normal(ks[4], (HID,), jnp.float32),
            s * jax.random.normal(ks[5], (HID,), jnp.float32)], axis=0),
        "vec1": jnp.stack([
            s * jax.random.normal(ks[6], (HID,), jnp.float32),
            1.0 + s * jax.random.normal(ks[7], (HID,), jnp.float32),
            s * jax.random.normal(ks[8], (HID,), jnp.float32),
            s * jax.random.normal(ks[9], (HID,), jnp.float32)], axis=0),
        # GCNConv linear weights (transposed torch layout): [Cin, Cout]
        "gw0": s * jax.random.normal(ks[10], (HID, HID), jnp.float32),
        "gw1": s * jax.random.normal(ks[11], (HID, HID), jnp.float32),
        # output Linear (transposed): [H, OUT], bias [1, OUT]
        "ow": s * jax.random.normal(ks[12], (HID, OUT), jnp.float32),
        "ob": s * jax.random.normal(ks[13], (1, OUT), jnp.float32),
    }

    # Node-feature sequences and one shared graph per sequence (the module only
    # uses graph_sequence[0].edge_index / edge_attr).
    x_seq = jax.random.normal(ks[14], (B, T, N, FIN), jnp.float32)
    x_flat = x_seq.reshape(B, T * N, FIN)          # wrapper-side flatten (free)

    a_hats = []
    for b in range(B):
        kb = jax.random.split(ks[15 + b], 3)
        src = jax.random.randint(kb[0], (E,), 0, N)
        off = jax.random.randint(kb[1], (E,), 1, N)          # no self-loop edges
        dst = (src + off) % N
        raw_w = jax.random.uniform(kb[2], (E,), jnp.float32, 0.1, 1.0)
        w_norm = jax.nn.softmax(raw_w)                       # F.softmax(edge_weight, dim=0)
        a_hats.append(build_normalized_adjacency(src, dst, w_norm, N))
    a_hat = jnp.stack(a_hats, axis=0)                        # [B, N, N]
    # block-diagonal adjacency shared by all time steps: kron(I_T, A_b)
    a_blk = jnp.stack([jnp.kron(jnp.eye(T, dtype=jnp.float32), a_hats[b])
                       for b in range(B)], axis=0)           # [B, T*N, T*N]

    out = base_stgcn_forward(x_flat, a_blk, params, N)
    out = jax.block_until_ready(out)

    ref = jnp.stack([reference_forward(x_seq[b], a_hat[b], params)
                     for b in range(B)], axis=0)
    np.testing.assert_allclose(np.asarray(out), np.asarray(ref), rtol=1e-4, atol=1e-4)

    print("KERNEL_OK")
</pallas_src>

<mosaic_0001>
module attributes {stable_mosaic.version = 11 : i64} {
  func.func @stgcn_kernel(%arg0: i32, %arg1: memref<1x128x4xf32, #tpu.memory_space<vmem>>, %arg2: memref<1x128x128xf32, #tpu.memory_space<vmem>>, %arg3: memref<4x96xf32, #tpu.memory_space<vmem>>, %arg4: memref<4x32xf32, #tpu.memory_space<vmem>>, %arg5: memref<32x32xf32, #tpu.memory_space<vmem>>, %arg6: memref<32x96xf32, #tpu.memory_space<vmem>>, %arg7: memref<4x32xf32, #tpu.memory_space<vmem>>, %arg8: memref<32x32xf32, #tpu.memory_space<vmem>>, %arg9: memref<32x8xf32, #tpu.memory_space<vmem>>, %arg10: memref<1x8xf32, #tpu.memory_space<vmem>>, %arg11: memref<1x16x8xf32, #tpu.memory_space<vmem>>) attributes {dimension_semantics = [#tpu.dimension_semantics<parallel>], iteration_bounds = array<i64: 2>, scalar_prefetch = 0 : i64, scratch_operands = 0 : i64, tpu.core_type = #tpu.core_type<tc>, window_params = [{transform_indices = @transform_0, window_bounds = array<i64: 1, 128, 4>}, {transform_indices = @transform_1, window_bounds = array<i64: 1, 128, 128>}, {pipeline_mode = #tpu.pipeline_mode<synchronous>, transform_indices = @transform_2, window_bounds = array<i64: 4, 96>}, {pipeline_mode = #tpu.pipeline_mode<synchronous>, transform_indices = @transform_3, window_bounds = array<i64: 4, 32>}, {pipeline_mode = #tpu.pipeline_mode<synchronous>, transform_indices = @transform_4, window_bounds = array<i64: 32, 32>}, {pipeline_mode = #tpu.pipeline_mode<synchronous>, transform_indices = @transform_5, window_bounds = array<i64: 32, 96>}, {pipeline_mode = #tpu.pipeline_mode<synchronous>, transform_indices = @transform_6, window_bounds = array<i64: 4, 32>}, {pipeline_mode = #tpu.pipeline_mode<synchronous>, transform_indices = @transform_7, window_bounds = array<i64: 32, 32>}, {pipeline_mode = #tpu.pipeline_mode<synchronous>, transform_indices = @transform_8, window_bounds = array<i64: 32, 8>}, {pipeline_mode = #tpu.pipeline_mode<synchronous>, transform_indices = @transform_9, window_bounds = array<i64: 1, 8>}, {transform_indices = @transform_10, window_bounds = array<i64: 1, 16, 8>}]} {
    %c0 = arith.constant 0 : index
    %c0_0 = arith.constant 0 : index
    %c0_1 = arith.constant 0 : index
    %0 = vector.load %arg2[%c0, %c0_0, %c0_1] : memref<1x128x128xf32, #tpu.memory_space<vmem>>, vector<1x128x128xf32>
    %1 = vector.shape_cast %0 : vector<1x128x128xf32> to vector<128x128xf32>
    %c0_2 = arith.constant 0 : index
    %c0_3 = arith.constant 0 : index
    %c0_4 = arith.constant 0 : index
    %2 = vector.load %arg1[%c0_2, %c0_3, %c0_4] : memref<1x128x4xf32, #tpu.memory_space<vmem>>, vector<1x128x4xf32>
    %3 = vector.shape_cast %2 : vector<1x128x4xf32> to vector<128x4xf32>
    %c0_5 = arith.constant 0 : index
    %c0_6 = arith.constant 0 : index
    %4 = vector.load %arg4[%c0_5, %c0_6] : memref<4x32xf32, #tpu.memory_space<vmem>>, vector<4x32xf32>
    %5 = vector.extract_strided_slice %4 {offsets = [0, 0], sizes = [1, 32], strides = [1, 1]} : vector<4x32xf32> to vector<1x32xf32>
    %6 = vector.extract_strided_slice %4 {offsets = [1, 0], sizes = [1, 32], strides = [1, 1]} : vector<4x32xf32> to vector<1x32xf32>
    %7 = vector.extract_strided_slice %4 {offsets = [2, 0], sizes = [1, 32], strides = [1, 1]} : vector<4x32xf32> to vector<1x32xf32>
    %8 = vector.extract_strided_slice %4 {offsets = [3, 0], sizes = [1, 32], strides = [1, 1]} : vector<4x32xf32> to vector<1x32xf32>
    %c0_7 = arith.constant 0 : index
    %c0_8 = arith.constant 0 : index
    %9 = vector.load %arg3[%c0_7, %c0_8] : memref<4x96xf32, #tpu.memory_space<vmem>>, vector<4x96xf32>
    %cst = arith.constant dense<0.000000e+00> : vector<128x96xf32>
    %10 = tpu.matmul %3, %9, %cst {dimension_numbers = #tpu.dot_dimension_numbers<[1], [0], [0], [1], [0, 0, 1, 1], [], []>} : vector<128x4xf32>, vector<4x96xf32>, vector<128x96xf32> -> vector<128x96xf32>
    %11 = vector.extract_strided_slice %10 {offsets = [0, 0], sizes = [128, 32], strides = [1, 1]} : vector<128x96xf32> to vector<128x32xf32>
    %12 = vector.extract_strided_slice %10 {offsets = [0, 32], sizes = [128, 32], strides = [1, 1]} : vector<128x96xf32> to vector<128x32xf32>
    %13 = vector.extract_strided_slice %10 {offsets = [0, 64], sizes = [128, 32], strides = [1, 1]} : vector<128x96xf32> to vector<128x32xf32>
    %cst_9 = arith.constant 0.000000e+00 : f32
    %14 = vector.broadcast %cst_9 : f32 to vector<16x32xf32>
    %15 = vector.broadcast %5 : vector<1x32xf32> to vector<128x32xf32>
    %16 = arith.addf %12, %15 : vector<128x32xf32>
    %17 = vector.extract_strided_slice %11 {offsets = [0, 0], sizes = [112, 32], strides = [1, 1]} : vector<128x32xf32> to vector<112x32xf32>
    %18 = tpu.concatenate %14, %17 in 0 : vector<16x32xf32>, vector<112x32xf32> -> vector<128x32xf32>
    %19 = arith.addf %16, %18 : vector<128x32xf32>
    %20 = vector.extract_strided_slice %13 {offsets = [16, 0], sizes = [112, 32], strides = [1, 1]} : vector<128x32xf32> to vector<112x32xf32>
    %21 = tpu.concatenate %20, %14 in 0 : vector<112x32xf32>, vector<16x32xf32> -> vector<128x32xf32>
    %22 = arith.addf %19, %21 : vector<128x32xf32>
    %cst_10 = arith.constant -1.000000e+01 : f32
    %cst_11 = arith.constant 1.000000e+01 : f32
    %23 = vector.broadcast %cst_10 : f32 to vector<128x32xf32>
    %24 = arith.maximumf %23, %22 : vector<128x32xf32>
    %25 = vector.broadcast %cst_11 : f32 to vector<128x32xf32>
    %26 = arith.minimumf %25, %24 : vector<128x32xf32>
    %27 = vector.shape_cast %26 : vector<128x32xf32> to vector<8x16x32xf32>
    %cst_12 = arith.constant dense<0.000000e+00> : vector<16x32xf32>
    %28 = vector.multi_reduction <add>, %27, %cst_12 [0] : vector<8x16x32xf32> to vector<16x32xf32>
    %cst_13 = arith.constant 1.250000e-01 : f32
    %29 = vector.broadcast %cst_13 : f32 to vector<16x32xf32>
    %30 = arith.mulf %28, %29 : vector<16x32xf32>
    %31 = vector.shape_cast %30 : vector<16x32xf32> to vector<1x16x32xf32>
    %32 = vector.broadcast %31 : vector<1x16x32xf32> to vector<8x16x32xf32>
    %33 = arith.subf %27, %32 : vector<8x16x32xf32>
    %34 = arith.mulf %33, %33 : vector<8x16x32xf32>
    %cst_14 = arith.constant dense<0.000000e+00> : vector<16x32xf32>
    %35 = vector.multi_reduction <add>, %34, %cst_14 [0] : vector<8x16x32xf32> to vector<16x32xf32>
    %cst_15 = arith.constant 1.250000e-01 : f32
    %36 = vector.broadcast %cst_15 : f32 to vector<16x32xf32>
    %37 = arith.mulf %35, %36 : vector<16x32xf32>
    %cst_16 = arith.constant 9.99999974E-6 : f32
    %38 = vector.broadcast %cst_16 : f32 to vector<16x32xf32>
    %39 = arith.addf %37, %38 : vector<16x32xf32>
    %40 = math.rsqrt %39 : vector<16x32xf32>
    %41 = vector.broadcast %6 : vector<1x32xf32> to vector<16x32xf32>
    %42 = arith.mulf %41, %40 : vector<16x32xf32>
    %43 = vector.shape_cast %42 : vector<16x32xf32> to vector<1x16x32xf32>
    %44 = vector.broadcast %43 : vector<1x16x32xf32> to vector<8x16x32xf32>
    %45 = arith.mulf %33, %44 : vector<8x16x32xf32>
    %46 = vector.shape_cast %7 : vector<1x32xf32> to vector<1x1x32xf32>
    %47 = vector.broadcast %46 : vector<1x1x32xf32> to vector<8x16x32xf32>
    %48 = arith.addf %45, %47 : vector<8x16x32xf32>
    %cst_17 = arith.constant 0.000000e+00 : f32
    %49 = vector.broadcast %cst_17 : f32 to vector<8x16x32xf32>
    %50 = arith.maximumf %48, %49 : vector<8x16x32xf32>
    %51 = vector.shape_cast %50 : vector<8x16x32xf32> to vector<128x32xf32>
    %c0_18 = arith.constant 0 : index
    %c0_19 = arith.constant 0 : index
    %52 = vector.load %arg5[%c0_18, %c0_19] : memref<32x32xf32, #tpu.memory_space<vmem>>, vector<32x32xf32>
    %cst_20 = arith.constant dense<0.000000e+00> : vector<128x32xf32>
    %53 = tpu.matmul %51, %52, %cst_20 {dimension_numbers = #tpu.dot_dimension_numbers<[1], [0], [0], [1], [0, 0, 1, 1], [], []>} : vector<128x32xf32>, vector<32x32xf32>, vector<128x32xf32> -> vector<128x32xf32>
    %cst_21 = arith.constant dense<0.000000e+00> : vector<128x32xf32>
    %54 = tpu.matmul %1, %53, %cst_21 {dimension_numbers = #tpu.dot_dimension_numbers<[1], [0], [0], [1], [0, 0, 1, 1], [], []>} : vector<128x128xf32>, vector<128x32xf32>, vector<128x32xf32> -> vector<128x32xf32>
    %55 = vector.broadcast %8 : vector<1x32xf32> to vector<128x32xf32>
    %56 = arith.addf %54, %55 : vector<128x32xf32>
    %cst_22 = arith.constant 0.000000e+00 : f32
    %57 = vector.broadcast %cst_22 : f32 to vector<128x32xf32>
    %58 = arith.maximumf %56, %57 : vector<128x32xf32>
    %cst_23 = arith.constant 1.000000e+01 : f32
    %59 = vector.broadcast %cst_23 : f32 to vector<128x32xf32>
    %60 = arith.minimumf %58, %59 : vector<128x32xf32>
    %c0_24 = arith.constant 0 : index
    %c0_25 = arith.constant 0 : index
    %61 = vector.load %arg7[%c0_24, %c0_25] : memref<4x32xf32, #tpu.memory_space<vmem>>, vector<4x32xf32>
    %62 = vector.extract_strided_slice %61 {offsets = [0, 0], sizes = [1, 32], strides = [1, 1]} : vector<4x32xf32> to vector<1x32xf32>
    %63 = vector.extract_strided_slice %61 {offsets = [1, 0], sizes = [1, 32], strides = [1, 1]} : vector<4x32xf32> to vector<1x32xf32>
    %64 = vector.extract_strided_slice %61 {offsets = [2, 0], sizes = [1, 32], strides = [1, 1]} : vector<4x32xf32> to vector<1x32xf32>
    %65 = vector.extract_strided_slice %61 {offsets = [3, 0], sizes = [1, 32], strides = [1, 1]} : vector<4x32xf32> to vector<1x32xf32>
    %c0_26 = arith.constant 0 : index
    %c0_27 = arith.constant 0 : index
    %66 = vector.load %arg6[%c0_26, %c0_27] : memref<32x96xf32, #tpu.memory_space<vmem>>, vector<32x96xf32>
    %cst_28 = arith.constant dense<0.000000e+00> : vector<128x96xf32>
    %67 = tpu.matmul %60, %66, %cst_28 {dimension_numbers = #tpu.dot_dimension_numbers<[1], [0], [0], [1], [0, 0, 1, 1], [], []>} : vector<128x32xf32>, vector<32x96xf32>, vector<128x96xf32> -> vector<128x96xf32>
    %68 = vector.extract_strided_slice %67 {offsets = [0, 0], sizes = [128, 32], strides = [1, 1]} : vector<128x96xf32> to vector<128x32xf32>
    %69 = vector.extract_strided_slice %67 {offsets = [0, 32], sizes = [128, 32], strides = [1, 1]} : vector<128x96xf32> to vector<128x32xf32>
    %70 = vector.extract_strided_slice %67 {offsets = [0, 64], sizes = [128, 32], strides = [1, 1]} : vector<128x96xf32> to vector<128x32xf32>
    %cst_29 = arith.constant 0.000000e+00 : f32
    %71 = vector.broadcast %cst_29 : f32 to vector<16x32xf32>
    %72 = vector.broadcast %62 : vector<1x32xf32> to vector<128x32xf32>
    %73 = arith.addf %69, %72 : vector<128x32xf32>
    %74 = vector.extract_strided_slice %68 {offsets = [0, 0], sizes = [112, 32], strides = [1, 1]} : vector<128x32xf32> to vector<112x32xf32>
    %75 = tpu.concatenate %71, %74 in 0 : vector<16x32xf32>, vector<112x32xf32> -> vector<128x32xf32>
    %76 = arith.addf %73, %75 : vector<128x32xf32>
    %77 = vector.extract_strided_slice %70 {offsets = [16, 0], sizes = [112, 32], strides = [1, 1]} : vector<128x32xf32> to vector<112x32xf32>
    %78 = tpu.concatenate %77, %71 in 0 : vector<112x32xf32>, vector<16x32xf32> -> vector<128x32xf32>
    %79 = arith.addf %76, %78 : vector<128x32xf32>
    %cst_30 = arith.constant -1.000000e+01 : f32
    %cst_31 = arith.constant 1.000000e+01 : f32
    %80 = vector.broadcast %cst_30 : f32 to vector<128x32xf32>
    %81 = arith.maximumf %80, %79 : vector<128x32xf32>
    %82 = vector.broadcast %cst_31 : f32 to vector<128x32xf32>
    %83 = arith.minimumf %82, %81 : vector<128x32xf32>
    %84 = vector.shape_cast %83 : vector<128x32xf32> to vector<8x16x32xf32>
    %cst_32 = arith.constant dense<0.000000e+00> : vector<16x32xf32>
    %85 = vector.multi_reduction <add>, %84, %cst_32 [0] : vector<8x16x32xf32> to vector<16x32xf32>
    %cst_33 = arith.constant 1.250000e-01 : f32
    %86 = vector.broadcast %cst_33 : f32 to vector<16x32xf32>
    %87 = arith.mulf %85, %86 : vector<16x32xf32>
    %88 = vector.shape_cast %87 : vector<16x32xf32> to vector<1x16x32xf32>
    %89 = vector.broadcast %88 : vector<1x16x32xf32> to vector<8x16x32xf32>
    %90 = arith.subf %84, %89 : vector<8x16x32xf32>
    %91 = arith.mulf %90, %90 : vector<8x16x32xf32>
    %cst_34 = arith.constant dense<0.000000e+00> : vector<16x32xf32>
    %92 = vector.multi_reduction <add>, %91, %cst_34 [0] : vector<8x16x32xf32> to vector<16x32xf32>
    %cst_35 = arith.constant 1.250000e-01 : f32
    %93 = vector.broadcast %cst_35 : f32 to vector<16x32xf32>
    %94 = arith.mulf %92, %93 : vector<16x32xf32>
    %cst_36 = arith.constant 9.99999974E-6 : f32
    %95 = vector.broadcast %cst_36 : f32 to vector<16x32xf32>
    %96 = arith.addf %94, %95 : vector<16x32xf32>
    %97 = math.rsqrt %96 : vector<16x32xf32>
    %98 = vector.broadcast %63 : vector<1x32xf32> to vector<16x32xf32>
    %99 = arith.mulf %98, %97 : vector<16x32xf32>
    %100 = vector.shape_cast %99 : vector<16x32xf32> to vector<1x16x32xf32>
    %101 = vector.broadcast %100 : vector<1x16x32xf32> to vector<8x16x32xf32>
    %102 = arith.mulf %90, %101 : vector<8x16x32xf32>
    %103 = vector.shape_cast %64 : vector<1x32xf32> to vector<1x1x32xf32>
    %104 = vector.broadcast %103 : vector<1x1x32xf32> to vector<8x16x32xf32>
    %105 = arith.addf %102, %104 : vector<8x16x32xf32>
    %cst_37 = arith.constant 0.000000e+00 : f32
    %106 = vector.broadcast %cst_37 : f32 to vector<8x16x32xf32>
    %107 = arith.maximumf %105, %106 : vector<8x16x32xf32>
    %108 = vector.shape_cast %107 : vector<8x16x32xf32> to vector<128x32xf32>
    %c0_38 = arith.constant 0 : index
    %c0_39 = arith.constant 0 : index
    %109 = vector.load %arg8[%c0_38, %c0_39] : memref<32x32xf32, #tpu.memory_space<vmem>>, vector<32x32xf32>
    %cst_40 = arith.constant dense<0.000000e+00> : vector<128x32xf32>
    %110 = tpu.matmul %108, %109, %cst_40 {dimension_numbers = #tpu.dot_dimension_numbers<[1], [0], [0], [1], [0, 0, 1, 1], [], []>} : vector<128x32xf32>, vector<32x32xf32>, vector<128x32xf32> -> vector<128x32xf32>
    %cst_41 = arith.constant dense<0.000000e+00> : vector<128x32xf32>
    %111 = tpu.matmul %1, %110, %cst_41 {dimension_numbers = #tpu.dot_dimension_numbers<[1], [0], [0], [1], [0, 0, 1, 1], [], []>} : vector<128x128xf32>, vector<128x32xf32>, vector<128x32xf32> -> vector<128x32xf32>
    %112 = vector.broadcast %65 : vector<1x32xf32> to vector<128x32xf32>
    %113 = arith.addf %111, %112 : vector<128x32xf32>
    %cst_42 = arith.constant 0.000000e+00 : f32
    %114 = vector.broadcast %cst_42 : f32 to vector<128x32xf32>
    %115 = arith.maximumf %113, %114 : vector<128x32xf32>
    %cst_43 = arith.constant 1.000000e+01 : f32
    %116 = vector.broadcast %cst_43 : f32 to vector<128x32xf32>
    %117 = arith.minimumf %115, %116 : vector<128x32xf32>
    %118 = vector.shape_cast %117 : vector<128x32xf32> to vector<8x16x32xf32>
    %cst_44 = arith.constant dense<0.000000e+00> : vector<16x32xf32>
    %119 = vector.multi_reduction <add>, %118, %cst_44 [0] : vector<8x16x32xf32> to vector<16x32xf32>
    %cst_45 = arith.constant 1.250000e-01 : f32
    %120 = vector.broadcast %cst_45 : f32 to vector<16x32xf32>
    %121 = arith.mulf %119, %120 : vector<16x32xf32>
    %c0_46 = arith.constant 0 : index
    %c0_47 = arith.constant 0 : index
    %122 = vector.load %arg9[%c0_46, %c0_47] : memref<32x8xf32, #tpu.memory_space<vmem>>, vector<32x8xf32>
    %cst_48 = arith.constant dense<0.000000e+00> : vector<16x8xf32>
    %123 = tpu.matmul %121, %122, %cst_48 {dimension_numbers = #tpu.dot_dimension_numbers<[1], [0], [0], [1], [0, 0, 1, 1], [], []>} : vector<16x32xf32>, vector<32x8xf32>, vector<16x8xf32> -> vector<16x8xf32>
    %c0_49 = arith.constant 0 : index
    %c0_50 = arith.constant 0 : index
    %124 = vector.load %arg10[%c0_49, %c0_50] : memref<1x8xf32, #tpu.memory_space<vmem>>, vector<1x8xf32>
    %125 = vector.broadcast %124 : vector<1x8xf32> to vector<16x8xf32>
    %126 = arith.addf %123, %125 : vector<16x8xf32>
    %c0_51 = arith.constant 0 : index
    %c0_52 = arith.constant 0 : index
    %c0_53 = arith.constant 0 : index
    %127 = vector.load %arg11[%c0_51, %c0_52, %c0_53] : memref<1x16x8xf32, #tpu.memory_space<vmem>>, vector<1x16x8xf32>
    %128 = vector.shape_cast %127 : vector<1x16x8xf32> to vector<16x8xf32>
    %129 = vector.shape_cast %126 : vector<16x8xf32> to vector<1x16x8xf32>
    tpu.vector_store %arg11[%c0_51, %c0_52, %c0_53], %129 {strides = array<i32>} : memref<1x16x8xf32, #tpu.memory_space<vmem>>, vector<1x16x8xf32>,
    return
  }
  func.func @transform_0(%arg0: i32) -> (i32, i32, i32) {
    %c0_i32 = arith.constant 0 : i32
    %c0_i32_0 = arith.constant 0 : i32
    %c0_i32_1 = arith.constant 0 : i32
    return %arg0, %c0_i32, %c0_i32_0 : i32, i32, i32
  }
  func.func @transform_1(%arg0: i32) -> (i32, i32, i32) {
    %c0_i32 = arith.constant 0 : i32
    %c0_i32_0 = arith.constant 0 : i32
    %c0_i32_1 = arith.constant 0 : i32
    return %arg0, %c0_i32, %c0_i32_0 : i32, i32, i32
  }
  func.func @transform_2(%arg0: i32) -> (i32, i32) {
    %c0_i32 = arith.constant 0 : i32
    %c0_i32_0 = arith.constant 0 : i32
    %c0_i32_1 = arith.constant 0 : i32
    return %c0_i32, %c0_i32_0 : i32, i32
  }
  func.func @transform_3(%arg0: i32) -> (i32, i32) {
    %c0_i32 = arith.constant 0 : i32
    %c0_i32_0 = arith.constant 0 : i32
    %c0_i32_1 = arith.constant 0 : i32
    return %c0_i32, %c0_i32_0 : i32, i32
  }
  func.func @transform_4(%arg0: i32) -> (i32, i32) {
    %c0_i32 = arith.constant 0 : i32
    %c0_i32_0 = arith.constant 0 : i32
    %c0_i32_1 = arith.constant 0 : i32
    return %c0_i32, %c0_i32_0 : i32, i32
  }
  func.func @transform_5(%arg0: i32) -> (i32, i32) {
    %c0_i32 = arith.constant 0 : i32
    %c0_i32_0 = arith.constant 0 : i32
    %c0_i32_1 = arith.constant 0 : i32
    return %c0_i32, %c0_i32_0 : i32, i32
  }
  func.func @transform_6(%arg0: i32) -> (i32, i32) {
    %c0_i32 = arith.constant 0 : i32
    %c0_i32_0 = arith.constant 0 : i32
    %c0_i32_1 = arith.constant 0 : i32
    return %c0_i32, %c0_i32_0 : i32, i32
  }
  func.func @transform_7(%arg0: i32) -> (i32, i32) {
    %c0_i32 = arith.constant 0 : i32
    %c0_i32_0 = arith.constant 0 : i32
    %c0_i32_1 = arith.constant 0 : i32
    return %c0_i32, %c0_i32_0 : i32, i32
  }
  func.func @transform_8(%arg0: i32) -> (i32, i32) {
    %c0_i32 = arith.constant 0 : i32
    %c0_i32_0 = arith.constant 0 : i32
    %c0_i32_1 = arith.constant 0 : i32
    return %c0_i32, %c0_i32_0 : i32, i32
  }
  func.func @transform_9(%arg0: i32) -> (i32, i32) {
    %c0_i32 = arith.constant 0 : i32
    %c0_i32_0 = arith.constant 0 : i32
    %c0_i32_1 = arith.constant 0 : i32
    return %c0_i32, %c0_i32_0 : i32, i32
  }
  func.func @transform_10(%arg0: i32) -> (i32, i32, i32) {
    %c0_i32 = arith.constant 0 : i32
    %c0_i32_0 = arith.constant 0 : i32
    %c0_i32_1 = arith.constant 0 : i32
    return %arg0, %c0_i32, %c0_i32_0 : i32, i32, i32
  }
}

</mosaic_0001>

<bundles_post_ra>
// kernel: tpu_custom_call.1
= control target key start
LH: loop header
LB: loop body
LE: loop exit
PB: predicated region body
PF: predicated region fallthrough
CT: control target
= control target key end

     0   :  { %15 = vsyncpa [#allocation3], 0  ;;  %s4594_s0 = inlined_call_operand.vmem [shape: f32[2,128,4], index: 0, kind: input, shape index: {}]   ;;  %s4595_s1 = inlined_call_operand.vmem [shape: f32[2,128,128], index: 1, kind: input, shape index: {}]   ;;  %s4596_s2 = inlined_call_operand.hbm [shape: f32[4,96], index: 2, kind: input, shape index: {}]   ;;  %s4597_s3 = inlined_call_operand.hbm [shape: f32[4,32], index: 3, kind: input, shape index: {}]   ;;  %s4598_s4 = inlined_call_operand.vmem [shape: f32[32,32], index: 4, kind: input, shape index: {}]   ;;  %s4599_s5 = inlined_call_operand.vmem [shape: f32[32,96], index: 5, kind: input, shape index: {}]   ;;  %s4600_s6 = inlined_call_operand.hbm [shape: f32[4,32], index: 6, kind: input, shape index: {}]   ;;  %s4601_s7 = inlined_call_operand.hbm [shape: f32[32,32], index: 7, kind: input, shape index: {}]   ;;  %s4602_s8 = inlined_call_operand.vmem [shape: f32[32,8], index: 8, kind: input, shape index: {}]   ;;  %s4603_s9 = inlined_call_operand.vmem [shape: f32[1,8], index: 9, kind: input, shape index: {}]   ;;  %s4604_s10 = inlined_call_operand.vmem [shape: f32[2,16,8], index: 10, kind: output, shape index: {}]  }
   0x1   :  { %16 = vsyncpa [#allocation5], 0 }
   0x2   :  { %17 = vsyncpa [#allocation8], 0  ;;  %s3533_s13 = smov 0  }
   0x3 LB: > { %s3469_s14 = smov [#allocation4]   ;;  %s3539_s16 = sadd.s32 4294967295, %s3467_s13   ;;  %s3467_s13 = sphi %s3533_s13, %s23_s13  }
   0x4   : > { %s298_s15 = sshll.u32 %s3469_s14, 4  ;;  %p2661_p0 = scmp.ge.s32.totalorder %s3467_s13, 1  ;;  %s3544_s15 = int_to_ptr.vmem [resolvable:$true] %s298_s15 }
   0x5   : > { %p274_p1 = scmp.lt.s32.totalorder %s3467_s13, 3  ;;  %p3300_p2 = scmp.eq.s32.totalorder %s3539_s16, 0 }
   0x6   : > { %s3470_s18 = smov [#allocation2]   ;;  %s3471_s20 = smov [#allocation6]  }
   0x7   : > { %p3546_p3 = pnand %p2661_p0, %p274_p1  ;;  %s287_s19 = sshll.u32 %s3470_s18, 4  ;;  %s3552_s19 = int_to_ptr.vmem [resolvable:$true] %s287_s19 }
   0x8   : > { %s315_s21 = sshll.u32 %s3471_s20, 4  ;;  %s3472_s23 = smov [#allocation7]   ;;  %s3560_s21 = int_to_ptr.vmem [resolvable:$true] %s315_s21 }
   0x9   : > { %p3287_p4 = pneg %p3546_p3  ;;  %s325_s24 = sshll.u32 %s3472_s23, 4  ;;  %s3562_s24 = int_to_ptr.vmem [resolvable:$true] %s325_s24 }
   0xa   : > { %s3337_s27 = scalar_lea.hbm %s4597_s3, 64 }
   0xb   : > { %p3556_p5 = pnand %p3300_p2, %p3287_p4  ;;  %p3338_p6 = scmp.ne.s32.totalorder %s4597_s3, %s3337_s27 }
   0xc   : > { %p3344_p10 = scmp.lt.u32.totalorder %s3337_s27, %s4597_s3 }
   0xd   : > { %p3572_p7 = pneg %p3556_p5 }
   0xf   : > { %p3340_p8 = pnand %p3572_p7, %p3338_p6 }
  0x11   : > { %p3341_p9 = pneg %p3340_p8 }
  0x13   : > { %p3346_p11 = pnand %p3344_p10, %p3341_p9 }
  0x15   : > { %3349 = shalt.err (!%p3346_p11)
}
  0x16   : > { %s3350_s14 = scalar_lea.vmem %s3544_s15, 64  ;;  %p3358_p1 = scmp.lt.s32.totalorder %s3544_s15, %s3544_s15 }
  0x17   : > { %p3351_p12 = scmp.ne.s32.totalorder %s3544_s15, %s3350_s14  ;;  %p3359_p4 = scmp.lt.s32.totalorder %s3350_s14, %s3350_s14 }
  0x19   : > { %p3353_p13 = pnand %p3351_p12, %p3572_p7  ;;  %p3360_p6 = por %p3359_p4, %p3358_p1 }
  0x1b   : > { %p3354_p0 = pneg %p3353_p13 }
  0x1d   : > { %p3361_p8 = pnand %p3360_p6, %p3354_p0 }
  0x1f   : > { %3364 = shalt.err (!%p3361_p8)
}
  0x20   : > { %3293 = dma.hbm_to_vmem [thread:$0]  (!%p3556_p5), %s4597_s3, 64, %s3544_s15, [#allocation5]  }
  0x21   : > { %s3365_s26 = scalar_lea.hbm %s4596_s2, 64 }
  0x22   : > { %p3366_p9 = scmp.ne.s32.totalorder %s4596_s2, %s3365_s26  ;;  %p3372_p12 = scmp.lt.u32.totalorder %s3365_s26, %s4596_s2 }
  0x24   : > { %p3368_p10 = pnand %p3366_p9, %p3572_p7 }
  0x26   : > { %p3369_p11 = pneg %p3368_p10 }
  0x28   : > { %p3374_p13 = pnand %p3372_p12, %p3369_p11 }
  0x2a   : > { %3377 = shalt.err (!%p3374_p13)
}
  0x2b   : > { %s3378_s15 = scalar_lea.vmem %s3552_s19, 64  ;;  %p3386_p6 = scmp.lt.s32.totalorder %s3552_s19, %s3552_s19 }
  0x2c   : > { %p3379_p0 = scmp.ne.s32.totalorder %s3552_s19, %s3378_s15  ;;  %p3387_p8 = scmp.lt.s32.totalorder %s3378_s15, %s3378_s15 }
  0x2e   : > { %p3381_p1 = pnand %p3379_p0, %p3572_p7  ;;  %p3388_p9 = por %p3387_p8, %p3386_p6 }
  0x30   : > { %p3382_p4 = pneg %p3381_p1 }
  0x32   : > { %p3389_p10 = pnand %p3388_p9, %p3382_p4 }
  0x34   : > { %3392 = shalt.err (!%p3389_p10)
}
  0x35   : > { %3290 = dma.hbm_to_vmem [thread:$0]  (!%p3556_p5), %s4596_s2, 64, %s3552_s19, [#allocation3]  }
  0x36   : > { %s3393_s23 = scalar_lea.hbm %s4600_s6, 64 }
  0x37   : > { %p3394_p11 = scmp.ne.s32.totalorder %s4600_s6, %s3393_s23  ;;  %p3400_p0 = scmp.lt.u32.totalorder %s3393_s23, %s4600_s6 }
  0x39   : > { %p3396_p12 = pnand %p3394_p11, %p3572_p7 }
  0x3b   : > { %p3397_p13 = pneg %p3396_p12 }
  0x3d   : > { %p3402_p1 = pnand %p3400_p0, %p3397_p13 }
  0x3f   : > { %3405 = shalt.err (!%p3402_p1)
}
  0x40   : > { %s3406_s19 = scalar_lea.vmem %s3560_s21, 64  ;;  %p3414_p9 = scmp.lt.s32.totalorder %s3560_s21, %s3560_s21 }
  0x41   : > { %p3407_p4 = scmp.ne.s32.totalorder %s3560_s21, %s3406_s19  ;;  %p3415_p10 = scmp.lt.s32.totalorder %s3406_s19, %s3406_s19 }
  0x43   : > { %p3409_p6 = pnand %p3407_p4, %p3572_p7  ;;  %p3416_p11 = por %p3415_p10, %p3414_p9 }
  0x45   : > { %p3410_p8 = pneg %p3409_p6 }
  0x47   : > { %p3417_p12 = pnand %p3416_p11, %p3410_p8 }
  0x49   : > { %3420 = shalt.err (!%p3417_p12)
}
  0x4a   : > { %3296 = dma.hbm_to_vmem [thread:$0]  (!%p3556_p5), %s4600_s6, 64, %s3560_s21, [#allocation5]  }
  0x4b   : > { %s3421_s14 = scalar_lea.hbm %s4601_s7, 512 }
  0x4c   : > { %p3422_p13 = scmp.ne.s32.totalorder %s4601_s7, %s3421_s14  ;;  %p3428_p4 = scmp.lt.u32.totalorder %s3421_s14, %s4601_s7 }
  0x4e   : > { %p3424_p0 = pnand %p3422_p13, %p3572_p7 }
  0x50   : > { %p3425_p1 = pneg %p3424_p0 }
  0x52   : > { %p3430_p6 = pnand %p3428_p4, %p3425_p1 }
  0x54   : > { %3433 = shalt.err (!%p3430_p6)
}
  0x55   : > { %s3434_s21 = scalar_lea.vmem %s3562_s24, 512  ;;  %p3442_p11 = scmp.lt.s32.totalorder %s3562_s24, %s3562_s24 }
  0x56   : > { %p3435_p8 = scmp.ne.s32.totalorder %s3562_s24, %s3434_s21  ;;  %p3443_p12 = scmp.lt.s32.totalorder %s3434_s21, %s3434_s21 }
  0x58   : > { %p3437_p9 = pnand %p3435_p8, %p3572_p7  ;;  %p3444_p13 = por %p3443_p12, %p3442_p11 }
  0x5a   : > { %p3438_p10 = pneg %p3437_p9 }
  0x5c   : > { %p3445_p0 = pnand %p3444_p13, %p3438_p10 }
  0x5e   : > { %3448 = shalt.err (!%p3445_p0)
}
  0x5f   : > { %s3473_s26 = smov 128   ;;  %s3474_s27 = smov 8  }
  0x60   : > { %3299 = dma.hbm_to_vmem [thread:$0]  (!%p3556_p5), %s4601_s7, 512, %s3562_s24, [#allocation8], %s3473_s26, %s3473_s26, %s3474_s27  }
  0x61   : > { %363 = sbr.rel (%p3546_p3) target bundleno = 2865 (0xb31), region = 60 }
  0x68   : > { %3454 = dma.done.wait (%p3300_p2), [#allocation3], 64  }
  0x69   : > { %3456 = vsyncadd (%p3300_p2), [#allocation3], 4294967232 }
  0x6a   : > { %3458 = dma.done.wait (%p3300_p2), [#allocation5], 128  }
  0x6b   : > { %3460 = vsyncadd (%p3300_p2), [#allocation5], 4294967168 }
  0x6c   : > { %3462 = dma.done.wait (%p3300_p2), [#allocation8], 512  }
  0x6d   : > { %3464 = vsyncadd (%p3300_p2), [#allocation8], 4294966784  ;;  %p418_p3 = scmp.lt.s32.totalorder %s3539_s16, 1  ;;  %v665_v0 = vlaneseq  ;;  %v3475_v1 = vmov 0.0   ;;  %s3476_s17 = smov 32   ;;  %vm516_vm0 = vcmask 1043456  }
  0x6e   : > { %704 = vrot.lane.b32.xlu0 %v3475_v1, %s3476_s17  ;;  %vm467_vm1 = vcmask 31744   ;;  %v466_v3 = vld [vmem:[#allocation2] sm:$0xf]  ;;  %v3701_v10 = vld [vmem:[#allocation4] sm:$0xf]  ;;  %s3477_s11 = smov 96  }
  0x6f   : > { %s4611_s16 = smov (!%p418_p3, %s3539_s16), 1  ;;  %v3690_v2 = vshrl.u32 %v665_v0, 7  ;;  %2930 = vmatprep.subr.msk.mxu0 %vm516_vm0, %v466_v3  ;;  %vm860_vm2 = vcmask 523520   ;;  %vm1091_vm3 = vcmask 261120   ;;  %vm2548_vm4 = vcmask 64512  }
  0x70   : > { %s2780_s22 = sshll.u32 %s4611_s16, 7  ;;  %2931 = vmatpush3.msk.msra.mxu0 %vm516_vm0, %v466_v3  ;;  %s2782_s27 = sshll.u32 %s4611_s16, 4 }
  0x71   : > { %s3688_s29 = scalar_lea.vmem %s4594_s0, %s2780_s22  ;;  %v667_v7 = vsub.s32 0, %v3690_v2  ;;  %s4084_s28 = scalar_lea.vmem %s4595_s1, %s2780_s22 }
  0x72   : > { %v449_v4 = vld [vmem:[%s3688_s29] sm:$0xff]  ;;  %v450_v5 = vld [vmem:[%s3688_s29 + $0x8] sm:$0xff]  ;;  %v451_v6 = vld [vmem:[%s3688_s29 + $0x10] sm:$0xff] }
  0x73   : > { %2932 = vmatprep.mubr.msk.f32.mxu0 %vm467_vm1, %v449_v4  ;;  %v452_v8 = vld [vmem:[%s3688_s29 + $0x18] sm:$0xff]  ;;  %v453_v9 = vld [vmem:[%s3688_s29 + $0x20] sm:$0xff]  ;;  %v668_v11 = vrot.slane %v3701_v10, %v667_v7  ;;  %v454_v12 = vld [vmem:[%s3688_s29 + $0x28] sm:$0xff] }
  0x74   : > { %2933 = vmatmul.mubr.msk.f32.vlgmr.msra.gmra.mrb[0].mxu0 %vm467_vm1, %v450_v5  ;;  %v455_v13 = vld [vmem:[%s3688_s29 + $0x30] sm:$0xff]  ;;  %v456_v14 = vld [vmem:[%s3688_s29 + $0x38] sm:$0xff]  ;;  %v457_v15 = vld [vmem:[%s3688_s29 + $0x40] sm:$0xff] }
  0x75   : > { %2935 = vmatprep.mubr.msk.f32.mxu0 %vm467_vm1, %v451_v6  ;;  %670 = vrot.lane.b32.xlu0 %v668_v11, %s3476_s17  ;;  %v458_v16 = vld [vmem:[%s3688_s29 + $0x48] sm:$0xff]  ;;  %v459_v17 = vld [vmem:[%s3688_s29 + $0x50] sm:$0xff]  ;;  %v460_v18 = vld [vmem:[%s3688_s29 + $0x58] sm:$0xff] }
  0x76   : > { %v461_v19 = vld [vmem:[%s3688_s29 + $0x60] sm:$0xff]  ;;  %v462_v20 = vld [vmem:[%s3688_s29 + $0x68] sm:$0xff]  ;;  %v463_v21 = vld [vmem:[%s3688_s29 + $0x70] sm:$0xff] }
  0x77   : > { %v464_v22 = vld [vmem:[%s3688_s29 + $0x78] sm:$0xff]  ;;  %s432_s29 = scalar_lea.vmem %s4604_s10, %s2782_s27 }
  0x78   : > { %2936 = vmatmul.mubr.msk.f32.gmra.mrb[2].mxu0 %vm467_vm1, %v452_v8 }
  0x79   : > { %2938 = vmatprep.mubr.msk.f32.mxu0 %vm467_vm1, %v453_v9 }
  0x7c   : > { %2939 = vmatmul.mubr.msk.f32.gmra.mrb[4].mxu0 %vm467_vm1, %v454_v12 }
  0x7d   : > { %2941 = vmatprep.mubr.msk.f32.mxu0 %vm467_vm1, %v455_v13 }
  0x80   : > { %2942 = vmatmul.mubr.msk.f32.gmra.mrb[6].mxu0 %vm467_vm1, %v456_v14 }
  0x81   : > { %2944 = vmatprep.mubr.msk.f32.mxu0 %vm467_vm1, %v457_v15 }
  0x84   : > { %2945 = vmatmul.mubr.msk.f32.gmra.mrb[8].mxu0 %vm467_vm1, %v458_v16 }
  0x85   : > { %2947 = vmatprep.mubr.msk.f32.mxu0 %vm467_vm1, %v459_v17 }
  0x88   : > { %2948 = vmatmul.mubr.msk.f32.gmra.mrb[10].mxu0 %vm467_vm1, %v460_v18 }
  0x89   : > { %2950 = vmatprep.mubr.msk.f32.mxu0 %vm467_vm1, %v461_v19 }
  0x8c   : > { %2951 = vmatmul.mubr.msk.f32.gmra.mrb[12].mxu0 %vm467_vm1, %v462_v20 }
  0x8d   : > { %2953 = vmatprep.mubr.msk.f32.mxu0 %vm467_vm1, %v463_v21 }
  0x90   : > { %2954 = vmatmul.mubr.msk.f32.gmra.mrb[14].mxu0 %vm467_vm1, %v464_v22 }
  0xe0   : > { %v3803_v39 = vpop.permute.xlu0 %704 }
  0xe7   : > { %v3805_v40 = vpop.permute.xlu0 %670 }
 0x147   : > { %v2934_v23 = vpop.f32.mrb[0].mxu0 }
 0x148   : > { %708 = vrot.lane.b32.xlu1 %v2934_v23, %s3476_s17  ;;  %v586_v24 = vpop.f32.mrb[1].mxu0  ;;  %v674_v44 = vadd.f32 %v2934_v23, %v3805_v40 }
 0x149   : > { %v673_v45 = vadd.f32 %v3805_v40, %v586_v24 }
 0x14a   : > { %v750_v48 = vadd.f32 %v3803_v39, %v674_v44 }
 0x14b   : > { %v2937_v25 = vpop.f32.mrb[2].mxu0  ;;  %v749_v49 = vadd.f32 %v3803_v39, %v673_v45 }
 0x14c   : > { %706 = vrot.lane.b32.xlu1 %v586_v24, %s3476_s17  ;;  %769 = vrot.lane.b32.xlu0 %v2937_v25, %s3477_s11  ;;  %v596_v26 = vpop.f32.mrb[3].mxu0  ;;  %v676_v53 = vadd.f32 %v2937_v25, %v3805_v40 }
 0x14d   : > { %v675_v54 = vadd.f32 %v3805_v40, %v596_v26 }
 0x14f   : > { %v2940_v27 = vpop.f32.mrb[4].mxu0 }
 0x150   : > { %712 = vrot.lane.b32.xlu1 %v2937_v25, %s3476_s17  ;;  %710 = vrot.lane.b32.xlu0 %v596_v26, %s3476_s17  ;;  %v3736_v28 = vpop.f32.mrb[5].mxu0  ;;  %v678_v61 = vadd.f32 %v2940_v27, %v3805_v40 }
 0x151   : > { %v677_v6 = vadd.f32 %v3805_v40, %v3736_v28 }
 0x153   : > { %v3738_v29 = vpop.f32.mrb[6].mxu0 }
 0x154   : > { %767 = vrot.lane.b32.xlu1 %v596_v26, %s3477_s11  ;;  %716 = vrot.lane.b32.xlu0 %v2940_v27, %s3476_s17  ;;  %v3742_v30 = vpop.f32.mrb[7].mxu0  ;;  %v680_v21 = vadd.f32 %v3738_v29, %v3805_v40 }
 0x157   : > { %v3744_v31 = vpop.f32.mrb[8].mxu0 }
 0x158   : > { %773 = vrot.lane.b32.xlu1 %v2940_v27, %s3477_s11  ;;  %771 = vrot.lane.b32.xlu0 %v3736_v28, %s3477_s11  ;;  %v3749_v32 = vpop.f32.mrb[9].mxu0 }
 0x15b   : > { %v3751_v33 = vpop.f32.mrb[10].mxu0 }
 0x15c   : > { %714 = vrot.lane.b32.xlu0 %v3736_v28, %s3476_s17  ;;  %777 = vrot.lane.b32.xlu1 %v3738_v29, %s3477_s11  ;;  %v3757_v34 = vpop.f32.mrb[11].mxu0 }
 0x15f   : > { %v3759_v35 = vpop.f32.mrb[12].mxu0 }
 0x160   : > { %720 = vrot.lane.b32.xlu0 %v3738_v29, %s3476_s17  ;;  %775 = vrot.lane.b32.xlu1 %v3742_v30, %s3477_s11  ;;  %v3765_v36 = vpop.f32.mrb[13].mxu0 }
 0x163   : > { %v3767_v37 = vpop.f32.mrb[14].mxu0 }
 0x164   : > { %718 = vrot.lane.b32.xlu0 %v3742_v30, %s3476_s17  ;;  %781 = vrot.lane.b32.xlu1 %v3744_v31, %s3477_s11  ;;  %v3773_v38 = vpop.f32.mrb[15].mxu0 }
 0x168   : > { %724 = vrot.lane.b32.xlu0 %v3744_v31, %s3476_s17  ;;  %779 = vrot.lane.b32.xlu1 %v3749_v32, %s3477_s11 }
 0x16c   : > { %722 = vrot.lane.b32.xlu0 %v3749_v32, %s3476_s17  ;;  %785 = vrot.lane.b32.xlu1 %v3751_v33, %s3477_s11 }
 0x170   : > { %728 = vrot.lane.b32.xlu0 %v3751_v33, %s3476_s17  ;;  %783 = vrot.lane.b32.xlu1 %v3757_v34, %s3477_s11 }
 0x174   : > { %726 = vrot.lane.b32.xlu0 %v3757_v34, %s3476_s17  ;;  %789 = vrot.lane.b32.xlu1 %v3759_v35, %s3477_s11 }
 0x178   : > { %732 = vrot.lane.b32.xlu0 %v3759_v35, %s3476_s17  ;;  %787 = vrot.lane.b32.xlu1 %v3765_v36, %s3477_s11 }
 0x17c   : > { %730 = vrot.lane.b32.xlu0 %v3765_v36, %s3476_s17  ;;  %791 = vrot.lane.b32.xlu1 %v3773_v38, %s3477_s11 }
 0x180   : > { %795 = vrot.lane.b32.xlu0 %v3475_v1, %s3477_s11  ;;  %793 = vrot.lane.b32.xlu1 %v3767_v37, %s3477_s11 }
 0x1ba   : > { %v709_v41 = vpop.permute.xlu1 %708 }
 0x1bb   : > { %v752_v56 = vadd.f32 %v709_v41, %v676_v53  ;;  %v679_v41 = vadd.f32 %v3805_v40, %v3742_v30 }
 0x1be   : > { %v707_v42 = vpop.permute.xlu1 %706  ;;  %v770_v43 = vpop.permute.xlu0 %769 }
 0x1bf   : > { %v3811_v50 = vadd.f32 %v770_v43, %v750_v48  ;;  %v751_v57 = vadd.f32 %v707_v42, %v675_v54  ;;  %v682_v48 = vadd.f32 %v3744_v31, %v3805_v40 }
 0x1c1   : > { %v2696_v58 = vclamps-f32 %v3811_v50, 10.0 }
 0x1c2   : > { %v713_v46 = vpop.permute.xlu1 %712  ;;  %v711_v47 = vpop.permute.xlu0 %710 }
 0x1c3   : > { %v754_v1 = vadd.f32 %v713_v46, %v678_v61  ;;  %v876_v5 = vsel %vm860_vm2, %v2696_v58, 0.0  ;;  %v753_v17 = vadd.f32 %v711_v47, %v677_v6 }
 0x1c6   : > { %v768_v51 = vpop.permute.xlu1 %767  ;;  %v717_v52 = vpop.permute.xlu0 %716 }
 0x1c7   : > { %v3815_v55 = vadd.f32 %v768_v51, %v749_v49  ;;  %v756_v25 = vadd.f32 %v717_v52, %v680_v21 }
 0x1c9   : > { %v2695_v62 = vclamps-f32 %v3815_v55, 10.0 }
 0x1ca   : > { %v774_v59 = vpop.permute.xlu1 %773  ;;  %v772_v60 = vpop.permute.xlu0 %771 }
 0x1cb   : > { %v3820_v63 = vadd.f32 %v774_v59, %v752_v56  ;;  %v3822_v0 = vadd.f32 %v772_v60, %v751_v57  ;;  %v861_v11 = vsel %vm860_vm2, %v2695_v62, 0.0  ;;  %v681_v57 = vadd.f32 %v3805_v40, %v3749_v32 }
 0x1cd   : > { %v2698_v3 = vclamps-f32 %v3820_v63, 10.0  ;;  %v2697_v4 = vclamps-f32 %v3822_v0, 10.0 }
 0x1ce   : > { %v715_v8 = vpop.permute.xlu0 %714  ;;  %v778_v9 = vpop.permute.xlu1 %777 }
 0x1cf   : > { %v877_v12 = vsel %vm860_vm2, %v2698_v3, 0.0  ;;  %v862_v13 = vsel %vm860_vm2, %v2697_v4, 0.0  ;;  %v3840_v14 = vadd.f32 %v778_v9, %v754_v1  ;;  %v755_v44 = vadd.f32 %v715_v8, %v679_v41 }
 0x1d0   : > { %v878_v15 = vadd.f32 %v877_v12, %v876_v5  ;;  %v863_v16 = vadd.f32 %v862_v13, %v861_v11  ;;  %v684_v8 = vadd.f32 %v3751_v33, %v3805_v40 }
 0x1d1   : > { %v2700_v18 = vclamps-f32 %v3840_v14, 10.0 }
 0x1d2   : > { %v721_v19 = vpop.permute.xlu0 %720  ;;  %v776_v20 = vpop.permute.xlu1 %775 }
 0x1d3   : > { %v879_v22 = vsel %vm860_vm2, %v2700_v18, 0.0  ;;  %v3848_v23 = vadd.f32 %v776_v20, %v753_v17  ;;  %v758_v52 = vadd.f32 %v721_v19, %v682_v48  ;;  %v683_v17 = vadd.f32 %v3805_v40, %v3757_v34 }
 0x1d4   : > { %v880_v24 = vadd.f32 %v879_v22, %v878_v15  ;;  %v688_v48 = vadd.f32 %v3767_v37, %v3805_v40 }
 0x1d5   : > { %v2699_v26 = vclamps-f32 %v3848_v23, 10.0 }
 0x1d6   : > { %v719_v27 = vpop.permute.xlu0 %718  ;;  %v782_v28 = vpop.permute.xlu1 %781 }
 0x1d7   : > { %v864_v42 = vsel %vm860_vm2, %v2699_v26, 0.0  ;;  %v3856_v29 = vadd.f32 %v782_v28, %v756_v25  ;;  %v757_v61 = vadd.f32 %v719_v27, %v681_v57  ;;  %v685_v27 = vadd.f32 %v3805_v40, %v3765_v36 }
 0x1d8   : > { %v865_v43 = vadd.f32 %v864_v42, %v863_v16 }
 0x1d9   : > { %v2702_v45 = vclamps-f32 %v3856_v29, 10.0 }
 0x1da   : > { %v725_v46 = vpop.permute.xlu0 %724  ;;  %v780_v47 = vpop.permute.xlu1 %779 }
 0x1db   : > { %v881_v49 = vsel %vm860_vm2, %v2702_v45, 0.0  ;;  %v3864_v30 = vadd.f32 %v780_v47, %v755_v44  ;;  %v760_v12 = vadd.f32 %v725_v46, %v684_v8  ;;  %v686_v44 = vadd.f32 %v3759_v35, %v3805_v40 }
 0x1dc   : > { %v882_v51 = vadd.f32 %v881_v49, %v880_v24  ;;  %v687_v49 = vadd.f32 %v3805_v40, %v3773_v38 }
 0x1dd   : > { %v2701_v53 = vclamps-f32 %v3864_v30, 10.0 }
 0x1de   : > { %v723_v54 = vpop.permute.xlu0 %722  ;;  %v786_v56 = vpop.permute.xlu1 %785 }
 0x1df   : > { %v866_v59 = vsel %vm860_vm2, %v2701_v53, 0.0  ;;  %v3872_v31 = vadd.f32 %v786_v56, %v758_v52  ;;  %v759_v22 = vadd.f32 %v723_v54, %v683_v17 }
 0x1e0   : > { %v867_v60 = vadd.f32 %v866_v59, %v865_v43 }
 0x1e1   : > { %v2704_v1 = vclamps-f32 %v3872_v31, 10.0 }
 0x1e2   : > { %v729_v5 = vpop.permute.xlu0 %728  ;;  %v784_v6 = vpop.permute.xlu1 %783 }
 0x1e3   : > { %v883_v9 = vsel %vm860_vm2, %v2704_v1, 0.0  ;;  %v820_v32 = vadd.f32 %v784_v6, %v757_v61  ;;  %v762_v54 = vadd.f32 %v729_v5, %v686_v44 }
 0x1e4   : > { %v884_v11 = vadd.f32 %v883_v9, %v882_v51 }
 0x1e5   : > { %v2703_v13 = vclamps-f32 %v820_v32, 10.0 }
 0x1e6   : > { %v727_v15 = vpop.permute.xlu0 %726  ;;  %v790_v16 = vpop.permute.xlu1 %789 }
 0x1e7   : > { %v868_v19 = vsel %vm860_vm2, %v2703_v13, 0.0  ;;  %v3883_v20 = vadd.f32 %v790_v16, %v760_v12  ;;  %v761_v34 = vadd.f32 %v727_v15, %v685_v27 }
 0x1e8   : > { %v869_v21 = vadd.f32 %v868_v19, %v867_v60 }
 0x1e9   : > { %v2706_v33 = vclamps-f32 %v3883_v20, 10.0 }
 0x1ea   : > { %v733_v24 = vpop.permute.xlu0 %732  ;;  %v788_v25 = vpop.permute.xlu1 %787 }
 0x1eb   : > { %v885_v28 = vsel %vm860_vm2, %v2706_v33, 0.0  ;;  %v822_v41 = vadd.f32 %v788_v25, %v759_v22  ;;  %v764_v56 = vadd.f32 %v733_v24, %v688_v48 }
 0x1ec   : > { %v886_v42 = vadd.f32 %v885_v28, %v884_v11 }
 0x1ed   : > { %v2705_v43 = vclamps-f32 %v822_v41, 10.0 }
 0x1ee   : > { %v731_v46 = vpop.permute.xlu0 %730  ;;  %v792_v47 = vpop.permute.xlu1 %791 }
 0x1ef   : > { %v870_v36 = vsel %vm860_vm2, %v2705_v43, 0.0  ;;  %v824_v51 = vadd.f32 %v792_v47, %v761_v34  ;;  %v763_v57 = vadd.f32 %v731_v46, %v687_v49 }
 0x1f0   : > { %v871_v52 = vadd.f32 %v870_v36, %v869_v21 }
 0x1f1   : > { %v2707_v59 = vclamps-f32 %v824_v51, 10.0 }
 0x1f2   : > { %v3898_v60 = vpop.permute.xlu0 %795  ;;  %v794_v61 = vpop.permute.xlu1 %793 }
 0x1f3   : > { %v872_v35 = vsel %vm860_vm2, %v2707_v59, 0.0  ;;  %v826_v6 = vadd.f32 %v3898_v60, %v763_v57  ;;  %v827_v37 = vadd.f32 %v3898_v60, %v764_v56  ;;  %v825_v8 = vadd.f32 %v794_v61, %v762_v54 }
 0x1f4   : > { %v873_v9 = vadd.f32 %v872_v35, %v871_v52 }
 0x1f5   : > { %v2709_v38 = vclamps-f32 %v826_v6, 10.0  ;;  %v2710_v40 = vclamps-f32 %v827_v37, 10.0  ;;  %v2708_v32 = vclamps-f32 %v825_v8, 10.0 }
 0x1f7   : > { %v874_v11 = vsel %vm860_vm2, %v2709_v38, 0.0  ;;  %v887_v5 = vsel %vm860_vm2, %v2708_v32, 0.0  ;;  %v889_v16 = vsel %vm860_vm2, %v2710_v40, 0.0 }
 0x1f8   : > { %v875_v12 = vadd.f32 %v874_v11, %v873_v9  ;;  %v888_v15 = vadd.f32 %v887_v5, %v886_v42 }
 0x1fa   : > { %v891_v17 = vmul.f32 0.125, %v875_v12  ;;  %v890_v19 = vadd.f32 %v889_v16, %v888_v15 }
 0x1fc   : > { %v3908_v21 = vsub.f32 %v2695_v62, %v891_v17  ;;  %v3912_v22 = vsub.f32 %v2697_v4, %v891_v17  ;;  %v3916_v24 = vsub.f32 %v2699_v26, %v891_v17  ;;  %v3920_v25 = vsub.f32 %v2701_v53, %v891_v17 }
 0x1fd   : > { %v3922_v27 = vsub.f32 %v2703_v13, %v891_v17  ;;  %v3924_v28 = vsub.f32 %v2705_v43, %v891_v17  ;;  %v3926_v41 = vsub.f32 %v2707_v59, %v891_v17  ;;  %v3928_v55 = vsub.f32 %v2709_v38, %v891_v17 }
 0x1fe   : > { %v909_v62 = vmul.f32 %v3908_v21, %v3908_v21  ;;  %v911_v0 = vmul.f32 %v3912_v22, %v3912_v22  ;;  %v913_v4 = vmul.f32 %v3916_v24, %v3916_v24  ;;  %v915_v23 = vmul.f32 %v3920_v25, %v3920_v25 }
 0x1ff   : > { %v917_v26 = vmul.f32 %v3922_v27, %v3922_v27  ;;  %v919_v42 = vmul.f32 %v3924_v28, %v3924_v28  ;;  %v892_v43 = vmul.f32 0.125, %v890_v19  ;;  %v921_v44 = vmul.f32 %v3926_v41, %v3926_v41 }
 0x200   : > { %v925_v30 = vsel %vm860_vm2, %v909_v62, 0.0  ;;  %v926_v53 = vsel %vm860_vm2, %v911_v0, 0.0  ;;  %v928_v34 = vsel %vm860_vm2, %v913_v4, 0.0  ;;  %v930_v47 = vsel %vm860_vm2, %v915_v23, 0.0 }
 0x201   : > { %v927_v13 = vadd.f32 %v926_v53, %v925_v30  ;;  %v932_v48 = vsel %vm860_vm2, %v917_v26, 0.0  ;;  %v3951_v49 = vsub.f32 %v2696_v58, %v892_v43  ;;  %v3955_v36 = vsub.f32 %v2698_v3, %v892_v43 }
 0x202   : > { %v3959_v51 = vsub.f32 %v2700_v18, %v892_v43  ;;  %v3963_v52 = vsub.f32 %v2702_v45, %v892_v43  ;;  %v3967_v56 = vsub.f32 %v2704_v1, %v892_v43  ;;  %v3971_v50 = vsub.f32 %v2706_v33, %v892_v43 }
 0x203   : > { %v929_v46 = vadd.f32 %v928_v34, %v927_v13  ;;  %v3973_v58 = vsub.f32 %v2708_v32, %v892_v43  ;;  %v3975_v63 = vsub.f32 %v2710_v40, %v892_v43  ;;  %v910_v3 = vmul.f32 %v3951_v49, %v3951_v49 }
 0x204   : > { %v912_v14 = vmul.f32 %v3955_v36, %v3955_v36  ;;  %v914_v18 = vmul.f32 %v3959_v51, %v3959_v51  ;;  %v923_v29 = vmul.f32 %v3928_v55, %v3928_v55  ;;  %v934_v31 = vsel %vm860_vm2, %v919_v42, 0.0 }
 0x205   : > { %v931_v54 = vadd.f32 %v930_v47, %v929_v46  ;;  %v916_v1 = vmul.f32 %v3963_v52, %v3963_v52  ;;  %v940_v20 = vsel %vm860_vm2, %v910_v3, 0.0  ;;  %v936_v61 = vsel %vm860_vm2, %v921_v44, 0.0 }
 0x206   : > { %v941_v33 = vsel %vm860_vm2, %v912_v14, 0.0  ;;  %v918_v35 = vmul.f32 %v3967_v56, %v3967_v56  ;;  %v943_v6 = vsel %vm860_vm2, %v914_v18, 0.0  ;;  %v938_v9 = vsel %vm860_vm2, %v923_v29, 0.0  ;;  %v1039_v18 = vld [vmem:[%s4598_s4] sm:$0xff]  ;;  %v1040_v29 = vld [vmem:[%s4598_s4 + $0x8] sm:$0xff] }
 0x207   : > { %v933_v45 = vadd.f32 %v932_v48, %v931_v54  ;;  %v942_v59 = vadd.f32 %v941_v33, %v940_v20  ;;  %v920_v38 = vmul.f32 %v3971_v50, %v3971_v50  ;;  %v945_v40 = vsel %vm860_vm2, %v916_v1, 0.0  ;;  %v1042_v1 = vld [vmem:[%s4598_s4 + $0x18] sm:$0xff] }
 0x208   : > { %v922_v5 = vmul.f32 %v3973_v58, %v3973_v58  ;;  %v947_v12 = vsel %vm860_vm2, %v918_v35, 0.0  ;;  %v924_v17 = vmul.f32 %v3975_v63, %v3975_v63  ;;  %v963_v43 = vsub.s32 1, %v3690_v2 }
 0x209   : > { %v935_v57 = vadd.f32 %v934_v31, %v933_v45  ;;  %v944_v8 = vadd.f32 %v943_v6, %v942_v59  ;;  %v949_v19 = vsel %vm860_vm2, %v920_v38, 0.0  ;;  %v1001_v46 = vsub.s32 2, %v3690_v2  ;;  %v1041_v45 = vld [vmem:[%s4598_s4 + $0x10] sm:$0xff] }
 0x20a   : > { %v951_v4 = vsel %vm860_vm2, %v922_v5, 0.0  ;;  %v953_v26 = vsel %vm860_vm2, %v924_v17, 0.0  ;;  %v964_v44 = vrot.slane %v3701_v10, %v963_v43  ;;  %v3175_v31 = vpack.c.bf16 %v1040_v29, %v1039_v18 }
 0x20b   : > { %v937_v37 = vadd.f32 %v936_v61, %v935_v57  ;;  %v946_v11 = vadd.f32 %v945_v40, %v944_v8  ;;  %v1002_v54 = vrot.slane %v3701_v10, %v1001_v46  ;;  %v3179_v20 = vpack.c.bf16 %v1042_v1, %v1041_v45 }
 0x20c   : > { %3176 = vmatprep.subr.bf16.mxu1 %v3175_v31 }
 0x20d   : > { %v939_v32 = vadd.f32 %v938_v9, %v937_v37  ;;  %v948_v16 = vadd.f32 %v947_v12, %v946_v11  ;;  %3178 = vmatpush3.bf16.msra.mxu1 %v3175_v31 }
 0x20e   : > { %3180 = vmatprep.subr.bf16.mxu1 %v3179_v20 }
 0x20f   : > { %v955_v15 = vmul.f32 0.125, %v939_v32  ;;  %v950_v0 = vadd.f32 %v949_v19, %v948_v16 }
 0x211   : > { %v957_v62 = vadd.f32 1e-05, %v955_v15  ;;  %v952_v23 = vadd.f32 %v951_v4, %v950_v0  ;;  %3182 = vmatpush3.bf16.msra.mxu1 %v3179_v20 }
 0x213   : > { %3325 = vrsqrt.f32 %v957_v62  ;;  %v954_v30 = vadd.f32 %v953_v26, %v952_v23 }
 0x215   : > { %v956_v53 = vmul.f32 0.125, %v954_v30 }
 0x217   : > { %v958_v13 = vadd.f32 1e-05, %v956_v53 }
 0x219   : > { %3327 = vrsqrt.f32 %v958_v13 }
 0x21d   : > { %v3326_v42 = vpop.eup %3325 }
 0x21e   : > { %967 = vrot.lane.b32.xlu1 %v3326_v42, %s3477_s11 }
 0x223   : > { %v3328_v34 = vpop.eup %3327 }
 0x224   : > { %969 = vrot.lane.b32.xlu0 %v3328_v34, %s3477_s11 }
 0x290   : > { %v968_v47 = vpop.permute.xlu1 %967 }
 0x291   : > { %v973_v48 = vmul.f32 %v968_v47, %v964_v44 }
 0x293   : > { %977 = vrot.lane.b32.xlu1 %v973_v48, %s3476_s17 }
 0x296   : > { %v970_v3 = vpop.permute.xlu0 %969 }
 0x297   : > { %1004 = vrot.lane.b32.xlu1 %v1002_v54, %s3476_s17  ;;  %v974_v14 = vmul.f32 %v970_v3, %v964_v44 }
 0x299   : > { %979 = vrot.lane.b32.xlu0 %v974_v14, %s3476_s17 }
 0x305   : > { %v978_v33 = vpop.permute.xlu1 %977 }
 0x306   : > { %v983_v57 = vmul.f32 %v978_v33, %v3908_v21  ;;  %v985_v35 = vmul.f32 %v978_v33, %v3912_v22  ;;  %v987_v40 = vmul.f32 %v978_v33, %v3916_v24  ;;  %v989_v15 = vmul.f32 %v978_v33, %v3920_v25 }
 0x307   : > { %v993_v23 = vmul.f32 %v978_v33, %v3924_v28  ;;  %v995_v13 = vmul.f32 %v978_v33, %v3926_v41  ;;  %v997_v47 = vmul.f32 %v978_v33, %v3928_v55 }
 0x309   : > { %v1005_v59 = vpop.permute.xlu1 %1004 }
 0x30a   : > { %v1007_v61 = vadd.f32 %v1005_v59, %v983_v57  ;;  %v1009_v37 = vadd.f32 %v1005_v59, %v985_v35  ;;  %v1011_v5 = vadd.f32 %v1005_v59, %v987_v40  ;;  %v1013_v16 = vadd.f32 %v1005_v59, %v989_v15  ;;  %v4087_v40 = vld [vmem:[%s4084_s28] sm:$0xff] }
 0x30b   : > { %v980_v8 = vpop.permute.xlu0 %979  ;;  %v1017_v30 = vadd.f32 %v1005_v59, %v993_v23  ;;  %v1019_v34 = vadd.f32 %v1005_v59, %v995_v13  ;;  %v1021_v54 = vadd.f32 %v1005_v59, %v997_v47  ;;  %3020 = vmatprep.mubr.f32.mxu0 %v4087_v40  ;;  %v434_v47 = vld [vmem:[%s4084_s28 + $0x8] sm:$0xff] }
 0x30c   : > { %v1023_v6 = vmax.f32 %v1007_v61, 0.0  ;;  %v984_v9 = vmul.f32 %v980_v8, %v3951_v49  ;;  %v986_v38 = vmul.f32 %v980_v8, %v3955_v36  ;;  %v1025_v11 = vmax.f32 %v1009_v37, 0.0 }
 0x30d   : > { %v988_v22 = vmul.f32 %v980_v8, %v3959_v51  ;;  %v1027_v49 = vmax.f32 %v1011_v5, 0.0  ;;  %v990_v24 = vmul.f32 %v980_v8, %v3963_v52  ;;  %v991_v36 = vmul.f32 %v978_v33, %v3922_v27  ;;  %v1453_v5 = vld [vmem:[%s4599_s5 + $0x10] sm:$0xff] }
 0x30e   : > { %1059 = vrot.lane.b32.xlu0 %v1023_v6, %s3477_s11  ;;  %v1008_v32 = vadd.f32 %v1005_v59, %v984_v9  ;;  %v1010_v21 = vadd.f32 %v1005_v59, %v986_v38  ;;  %v1029_v62 = vmax.f32 %v1013_v16, 0.0  ;;  %v992_v25 = vmul.f32 %v980_v8, %v3967_v56 }
 0x30f   : > { %v1012_v19 = vadd.f32 %v1005_v59, %v988_v22  ;;  %v1015_v0 = vadd.f32 %v1005_v59, %v991_v36  ;;  %v1014_v51 = vadd.f32 %v1005_v59, %v990_v24  ;;  %v994_v27 = vmul.f32 %v980_v8, %v3971_v50 }
 0x310   : > { %v1024_v12 = vmax.f32 %v1008_v32, 0.0  ;;  %v1026_v17 = vmax.f32 %v1010_v21, 0.0  ;;  %v1016_v52 = vadd.f32 %v1005_v59, %v992_v25  ;;  %v1033_v42 = vmax.f32 %v1017_v30, 0.0  ;;  %v1451_v32 = vld [vmem:[%s4599_s5] sm:$0xff]  ;;  %v1454_v21 = vld [vmem:[%s4599_s5 + $0x18] sm:$0xff] }
 0x311   : > { %v1028_v4 = vmax.f32 %v1012_v19, 0.0  ;;  %v1031_v26 = vmax.f32 %v1015_v0, 0.0  ;;  %v1030_v53 = vmax.f32 %v1014_v51, 0.0  ;;  %v1018_v56 = vadd.f32 %v1005_v59, %v994_v27 }
 0x312   : > { %1063 = vrot.lane.b32.xlu0 %v1025_v11, %s3477_s11  ;;  %1061 = vrot.lane.b32.xlu1 %v1024_v12, %s3477_s11  ;;  %v1032_v44 = vmax.f32 %v1016_v52, 0.0  ;;  %v996_v28 = vmul.f32 %v980_v8, %v3973_v58  ;;  %v1035_v48 = vmax.f32 %v1019_v34, 0.0  ;;  %v998_v41 = vmul.f32 %v980_v8, %v3975_v63  ;;  %v1452_v11 = vld [vmem:[%s4599_s5 + $0x8] sm:$0xff] }
 0x313   : > { %v1034_v3 = vmax.f32 %v1018_v56, 0.0  ;;  %v1037_v14 = vmax.f32 %v1021_v54, 0.0  ;;  %v3215_v12 = vpack.c.bf16 %v1452_v11, %v1451_v32  ;;  %v3219_v22 = vpack.c.bf16 %v1454_v21, %v1453_v5  ;;  %v436_v54 = vld [vmem:[%s4084_s28 + $0x18] sm:$0xff] }
 0x314   : > { %v1020_v50 = vadd.f32 %v1005_v59, %v996_v28  ;;  %v1022_v29 = vadd.f32 %v1005_v59, %v998_v41  ;;  %v4110_v41 = vld [vmem:[%s4084_s28 + $0x30] sm:$0xff] }
 0x315   : > { %3216 = vmatprep.subr.bf16.mxu1 %v3215_v12 }
 0x316   : > { %1067 = vrot.lane.b32.xlu0 %v1027_v49, %s3477_s11  ;;  %1065 = vrot.lane.b32.xlu1 %v1026_v17, %s3477_s11  ;;  %v1036_v18 = vmax.f32 %v1020_v50, 0.0  ;;  %v1038_v55 = vmax.f32 %v1022_v29, 0.0  ;;  %v4107_v50 = vld [vmem:[%s4084_s28 + $0x28] sm:$0xff] }
 0x317   : > { %v4123_v29 = vld [vmem:[%s4084_s28 + $0x48] sm:$0xff] }
 0x31a   : > { %1071 = vrot.lane.b32.xlu0 %v1029_v62, %s3477_s11  ;;  %1069 = vrot.lane.b32.xlu1 %v1028_v4, %s3477_s11 }
 0x31e   : > { %1075 = vrot.lane.b32.xlu0 %v1031_v26, %s3477_s11  ;;  %1073 = vrot.lane.b32.xlu1 %v1030_v53, %s3477_s11 }
 0x322   : > { %1079 = vrot.lane.b32.xlu0 %v1033_v42, %s3477_s11  ;;  %1077 = vrot.lane.b32.xlu1 %v1032_v44, %s3477_s11 }
 0x326   : > { %1083 = vrot.lane.b32.xlu0 %v1035_v48, %s3477_s11  ;;  %1081 = vrot.lane.b32.xlu1 %v1034_v3, %s3477_s11  ;;  %v435_v48 = vld [vmem:[%s4084_s28 + $0x10] sm:$0xff]  ;;  %v437_v3 = vld [vmem:[%s4084_s28 + $0x20] sm:$0xff] }
 0x32a   : > { %1087 = vrot.lane.b32.xlu0 %v1037_v14, %s3477_s11  ;;  %1085 = vrot.lane.b32.xlu1 %v1036_v18, %s3477_s11  ;;  %v4115_v14 = vld [vmem:[%s4084_s28 + $0x38] sm:$0xff]  ;;  %v4118_v18 = vld [vmem:[%s4084_s28 + $0x40] sm:$0xff] }
 0x32e   : > { %1089 = vrot.lane.b32.xlu1 %v1038_v55, %s3477_s11  ;;  %v4126_v55 = vld [vmem:[%s4084_s28 + $0x50] sm:$0xff] }
 0x380   : > { %v1060_v58 = vpop.permute.xlu0 %1059 }
 0x381   : > { %2964 = vmatprep.mubr.msk.f32.mxu1 %vm1091_vm3, %v1060_v58  ;;  %v4131_v58 = vld [vmem:[%s4084_s28 + $0x58] sm:$0xff] }
 0x384   : > { %v1064_v45 = vpop.permute.xlu0 %1063  ;;  %v1062_v31 = vpop.permute.xlu1 %1061 }
 0x385   : > { %2965 = vmatmul.mubr.msk.f32.vlgmr.msra.gmra.mrb[0].mxu1 %vm1091_vm3, %v1062_v31  ;;  %v4139_v31 = vld [vmem:[%s4084_s28 + $0x68] sm:$0xff] }
 0x386   : > { %2967 = vmatprep.mubr.msk.f32.mxu1 %vm1091_vm3, %v1064_v45  ;;  %3218 = vmatpush3.bf16.msra.mxu1 %v3215_v12  ;;  %v4134_v45 = vld [vmem:[%s4084_s28 + $0x60] sm:$0xff] }
 0x387   : > { %3220 = vmatprep.subr.bf16.mxu1 %v3219_v22 }
 0x388   : > { %v1068_v63 = vpop.permute.xlu0 %1067  ;;  %v1066_v1 = vpop.permute.xlu1 %1065 }
 0x389   : > { %2968 = vmatmul.mubr.msk.f32.gmra.mrb[2].mxu1 %vm1091_vm3, %v1066_v1  ;;  %v4147_v1 = vld [vmem:[%s4084_s28 + $0x78] sm:$0xff] }
 0x38a   : > { %2970 = vmatprep.mubr.msk.f32.mxu1 %vm1091_vm3, %v1068_v63  ;;  %3222 = vmatpush3.bf16.msra.mxu1 %v3219_v22  ;;  %v4142_v63 = vld [vmem:[%s4084_s28 + $0x70] sm:$0xff] }
 0x38c   : > { %v1072_v20 = vpop.permute.xlu0 %1071  ;;  %v1070_v33 = vpop.permute.xlu1 %1069 }
 0x38d   : > { %2971 = vmatmul.mubr.msk.f32.gmra.mrb[4].mxu1 %vm1091_vm3, %v1070_v33 }
 0x38e   : > { %2973 = vmatprep.mubr.msk.f32.mxu1 %vm1091_vm3, %v1072_v20  ;;  %v4150_v20 = vld [vmem:[#allocation6] sm:$0xf] }
 0x38f   : > { %v1651_v33 = vrot.slane %v4150_v20, %v667_v7 }
 0x390   : > { %v1076_v57 = vpop.permute.xlu0 %1075  ;;  %v1074_v59 = vpop.permute.xlu1 %1073 }
 0x391   : > { %2974 = vmatmul.mubr.msk.f32.gmra.mrb[6].mxu1 %vm1091_vm3, %v1074_v59  ;;  %1653 = vrot.lane.b32.xlu0 %v1651_v33, %s3476_s17 }
 0x392   : > { %2976 = vmatprep.mubr.msk.f32.mxu1 %vm1091_vm3, %v1076_v57  ;;  %v4605_v57 = vsub.s32 3, %v3690_v2 }
 0x394   : > { %v1080_v61 = vpop.permute.xlu0 %1079  ;;  %v1078_v35 = vpop.permute.xlu1 %1077  ;;  %v4160_v59 = vrot.slane %v3701_v10, %v4605_v57 }
 0x395   : > { %2977 = vmatmul.mubr.msk.f32.gmra.mrb[8].mxu1 %vm1091_vm3, %v1078_v35 }
 0x396   : > { %2979 = vmatprep.mubr.msk.f32.mxu1 %vm1091_vm3, %v1080_v61 }
 0x398   : > { %v1084_v6 = vpop.permute.xlu0 %1083  ;;  %v1082_v37 = vpop.permute.xlu1 %1081 }
 0x399   : > { %2980 = vmatmul.mubr.msk.f32.gmra.mrb[10].mxu1 %vm1091_vm3, %v1082_v37 }
 0x39a   : > { %2982 = vmatprep.mubr.msk.f32.mxu1 %vm1091_vm3, %v1084_v6 }
 0x39c   : > { %v1088_v8 = vpop.permute.xlu0 %1087  ;;  %v1086_v9 = vpop.permute.xlu1 %1085 }
 0x39d   : > { %2983 = vmatmul.mubr.msk.f32.gmra.mrb[12].mxu1 %vm1091_vm3, %v1086_v9 }
 0x39e   : > { %2985 = vmatprep.mubr.msk.f32.mxu1 %vm1091_vm3, %v1088_v8 }
 0x3a0   : > { %v1090_v38 = vpop.permute.xlu1 %1089 }
 0x3a1   : > { %2986 = vmatmul.mubr.msk.f32.gmra.mrb[14].mxu1 %vm1091_vm3, %v1090_v38 }
 0x458   : > { %v2966_v15 = vpop.f32.mrb[0].mxu1 }
 0x459   : > { %v1190_v49 = vpop.f32.mrb[1].mxu1 }
 0x45a   : > { %v3183_v16 = vpack.c.bf16 %v2966_v15, %v1190_v49 }
 0x45c   : > { %v2969_v17 = vpop.f32.mrb[2].mxu1  ;;  %3184 = vmatprep.subr.bf16.mxu0 %v3183_v16 }
 0x45d   : > { %v1200_v19 = vpop.f32.mrb[3].mxu1  ;;  %3186 = vmatpush3.bf16.msra.mxu0 %v3183_v16 }
 0x45e   : > { %v3187_v24 = vpack.c.bf16 %v2969_v17, %v1200_v19 }
 0x460   : > { %v2972_v36 = vpop.f32.mrb[4].mxu1  ;;  %3188 = vmatprep.subr.bf16.mxu0 %v3187_v24 }
 0x461   : > { %v1210_v62 = vpop.f32.mrb[5].mxu1  ;;  %3190 = vmatpush3.bf16.msra.mxu0 %v3187_v24 }
 0x462   : > { %v3191_v0 = vpack.c.bf16 %v2972_v36, %v1210_v62 }
 0x464   : > { %v2975_v4 = vpop.f32.mrb[6].mxu1  ;;  %3192 = vmatprep.subr.bf16.mxu0 %v3191_v0 }
 0x465   : > { %v1220_v51 = vpop.f32.mrb[7].mxu1  ;;  %3194 = vmatpush3.bf16.msra.mxu0 %v3191_v0 }
 0x466   : > { %v3195_v25 = vpack.c.bf16 %v2975_v4, %v1220_v51 }
 0x468   : > { %v2978_v23 = vpop.f32.mrb[8].mxu1  ;;  %3196 = vmatprep.subr.bf16.mxu0 %v3195_v25 }
 0x469   : > { %v1230_v26 = vpop.f32.mrb[9].mxu1  ;;  %3198 = vmatpush3.bf16.msra.mxu0 %v3195_v25 }
 0x46a   : > { %v3199_v30 = vpack.c.bf16 %v2978_v23, %v1230_v26 }
 0x46c   : > { %v2981_v53 = vpop.f32.mrb[10].mxu1  ;;  %3200 = vmatprep.subr.bf16.mxu0 %v3199_v30 }
 0x46d   : > { %v1240_v52 = vpop.f32.mrb[11].mxu1  ;;  %3202 = vmatpush3.bf16.msra.mxu0 %v3199_v30 }
 0x46e   : > { %v3203_v27 = vpack.c.bf16 %v2981_v53, %v1240_v52 }
 0x470   : > { %v2984_v13 = vpop.f32.mrb[12].mxu1  ;;  %3204 = vmatprep.subr.bf16.mxu0 %v3203_v27 }
 0x471   : > { %v1250_v42 = vpop.f32.mrb[13].mxu1  ;;  %3206 = vmatpush3.bf16.msra.mxu0 %v3203_v27 }
 0x472   : > { %v3207_v34 = vpack.c.bf16 %v2984_v13, %v1250_v42 }
 0x474   : > { %v2987_v44 = vpop.f32.mrb[14].mxu1  ;;  %3208 = vmatprep.subr.bf16.mxu0 %v3207_v34 }
 0x475   : > { %v1260_v56 = vpop.f32.mrb[15].mxu1  ;;  %3210 = vmatpush3.bf16.msra.mxu0 %v3207_v34 }
 0x476   : > { %v3211_v28 = vpack.c.bf16 %v2987_v44, %v1260_v56 }
 0x478   : > { %3212 = vmatprep.subr.bf16.mxu0 %v3211_v28 }
 0x479   : > { %3214 = vmatpush3.bf16.msra.mxu0 %v3211_v28 }
 0x47c   : > { %3021 = vmatmul.mubr.f32.vlgmr.msra.gmra.mrb[16].mxu0 %v434_v47 }
 0x47d   : > { %3023 = vmatprep.mubr.f32.mxu0 %v435_v48 }
 0x480   : > { %3024 = vmatmul.mubr.f32.gmra.mrb[18].mxu0 %v436_v54 }
 0x481   : > { %3026 = vmatprep.mubr.f32.mxu0 %v437_v3 }
 0x484   : > { %3027 = vmatmul.mubr.f32.gmra.mrb[20].mxu0 %v4107_v50 }
 0x485   : > { %3029 = vmatprep.mubr.f32.mxu0 %v4110_v41 }
 0x488   : > { %3030 = vmatmul.mubr.f32.gmra.mrb[22].mxu0 %v4115_v14 }
 0x489   : > { %3032 = vmatprep.mubr.f32.mxu0 %v4118_v18 }
 0x48c   : > { %3033 = vmatmul.mubr.f32.gmra.mrb[24].mxu0 %v4123_v29 }
 0x48d   : > { %3035 = vmatprep.mubr.f32.mxu0 %v4126_v55 }
 0x490   : > { %3036 = vmatmul.mubr.f32.gmra.mrb[26].mxu0 %v4131_v58 }
 0x491   : > { %3038 = vmatprep.mubr.f32.mxu0 %v4134_v45 }
 0x494   : > { %3039 = vmatmul.mubr.f32.gmra.mrb[28].mxu0 %v4139_v31 }
 0x495   : > { %3041 = vmatprep.mubr.f32.mxu0 %v4142_v63 }
 0x498   : > { %3042 = vmatmul.mubr.f32.gmra.mrb[30].mxu0 %v4147_v1 }
 0x54f   : > { %v3022_v61 = vpop.f32.mrb[16].mxu0 }
 0x550   : > { %v1345_v35 = vadd.f32 %v3022_v61, %v4160_v59  ;;  %v1339_v6 = vpop.f32.mrb[17].mxu0 }
 0x551   : > { %v1340_v37 = vadd.f32 %v1339_v6, %v4160_v59 }
 0x552   : > { %v1419_v8 = vmax.f32 %v1345_v35, 0.0 }
 0x553   : > { %v1418_v9 = vmax.f32 %v1340_v37, 0.0  ;;  %v3025_v38 = vpop.f32.mrb[18].mxu0 }
 0x554   : > { %v1355_v7 = vadd.f32 %v3025_v38, %v4160_v59  ;;  %v1349_v32 = vpop.f32.mrb[19].mxu0  ;;  %v1435_v12 = vmin.f32 %v1419_v8, 10.0 }
 0x555   : > { %v1434_v11 = vmin.f32 %v1418_v9, 10.0  ;;  %v1350_v5 = vadd.f32 %v1349_v32, %v4160_v59 }
 0x556   : > { %v1421_v21 = vmax.f32 %v1355_v7, 0.0 }
 0x557   : > { %v1420_v22 = vmax.f32 %v1350_v5, 0.0  ;;  %3052 = vmatprep.mubr.msk.f32.mxu1 %vm1091_vm3, %v1434_v11  ;;  %v3028_v10 = vpop.f32.mrb[20].mxu0 }
 0x558   : > { %v1437_v15 = vmin.f32 %v1421_v21, 10.0  ;;  %3053 = vmatmul.mubr.msk.f32.vlgmr.msra.gmra.mrb[16].mxu1 %vm1091_vm3, %v1435_v12  ;;  %v1365_v49 = vadd.f32 %v3028_v10, %v4160_v59  ;;  %v1359_v16 = vpop.f32.mrb[21].mxu0 }
 0x559   : > { %v1436_v17 = vmin.f32 %v1420_v22, 10.0  ;;  %v1360_v19 = vadd.f32 %v1359_v16, %v4160_v59 }
 0x55a   : > { %v1423_v24 = vmax.f32 %v1365_v49, 0.0 }
 0x55b   : > { %v1422_v36 = vmax.f32 %v1360_v19, 0.0  ;;  %3055 = vmatprep.mubr.msk.f32.mxu1 %vm1091_vm3, %v1436_v17  ;;  %v3031_v62 = vpop.f32.mrb[22].mxu0 }
 0x55c   : > { %v1439_v0 = vmin.f32 %v1423_v24, 10.0  ;;  %3056 = vmatmul.mubr.msk.f32.gmra.mrb[18].mxu1 %vm1091_vm3, %v1437_v15  ;;  %v1375_v4 = vadd.f32 %v3031_v62, %v4160_v59  ;;  %v1369_v51 = vpop.f32.mrb[23].mxu0 }
 0x55d   : > { %v1438_v25 = vmin.f32 %v1422_v36, 10.0  ;;  %v1370_v23 = vadd.f32 %v1369_v51, %v4160_v59 }
 0x55e   : > { %v1425_v26 = vmax.f32 %v1375_v4, 0.0 }
 0x55f   : > { %v1424_v30 = vmax.f32 %v1370_v23, 0.0  ;;  %3058 = vmatprep.mubr.msk.f32.mxu1 %vm1091_vm3, %v1438_v25  ;;  %v3034_v53 = vpop.f32.mrb[24].mxu0 }
 0x560   : > { %v1441_v52 = vmin.f32 %v1425_v26, 10.0  ;;  %3059 = vmatmul.mubr.msk.f32.gmra.mrb[20].mxu1 %vm1091_vm3, %v1439_v0  ;;  %v1385_v27 = vadd.f32 %v3034_v53, %v4160_v59  ;;  %v1379_v13 = vpop.f32.mrb[25].mxu0 }
 0x561   : > { %v1440_v42 = vmin.f32 %v1424_v30, 10.0  ;;  %v1380_v34 = vadd.f32 %v1379_v13, %v4160_v59 }
 0x562   : > { %v1427_v44 = vmax.f32 %v1385_v27, 0.0 }
 0x563   : > { %3061 = vmatprep.mubr.msk.f32.mxu1 %vm1091_vm3, %v1440_v42  ;;  %v1426_v56 = vmax.f32 %v1380_v34, 0.0  ;;  %v3037_v28 = vpop.f32.mrb[26].mxu0  ;;  %v4261_v42 = vpop.permute.xlu0 %1653 }
 0x564   : > { %v1443_v47 = vmin.f32 %v1427_v44, 10.0  ;;  %3062 = vmatmul.mubr.msk.f32.gmra.mrb[22].mxu1 %vm1091_vm3, %v1441_v52  ;;  %v1395_v48 = vadd.f32 %v3037_v28, %v4160_v59  ;;  %v1389_v54 = vpop.f32.mrb[27].mxu0 }
 0x565   : > { %v1442_v3 = vmin.f32 %v1426_v56, 10.0  ;;  %v1390_v33 = vadd.f32 %v1389_v54, %v4160_v59 }
 0x566   : > { %v1429_v61 = vmax.f32 %v1395_v48, 0.0 }
 0x567   : > { %3064 = vmatprep.mubr.msk.f32.mxu1 %vm1091_vm3, %v1442_v3  ;;  %v1428_v35 = vmax.f32 %v1390_v33, 0.0  ;;  %v3040_v6 = vpop.f32.mrb[28].mxu0 }
 0x568   : > { %v1445_v37 = vmin.f32 %v1429_v61, 10.0  ;;  %3065 = vmatmul.mubr.msk.f32.gmra.mrb[24].mxu1 %vm1091_vm3, %v1443_v47  ;;  %v1405_v8 = vadd.f32 %v3040_v6, %v4160_v59  ;;  %v1399_v9 = vpop.f32.mrb[29].mxu0 }
 0x569   : > { %v1444_v38 = vmin.f32 %v1428_v35, 10.0  ;;  %v1400_v7 = vadd.f32 %v1399_v9, %v4160_v59 }
 0x56a   : > { %v1431_v32 = vmax.f32 %v1405_v8, 0.0 }
 0x56b   : > { %3067 = vmatprep.mubr.msk.f32.mxu1 %vm1091_vm3, %v1444_v38  ;;  %v1430_v11 = vmax.f32 %v1400_v7, 0.0  ;;  %v3043_v5 = vpop.f32.mrb[30].mxu0 }
 0x56c   : > { %v1447_v12 = vmin.f32 %v1431_v32, 10.0  ;;  %3068 = vmatmul.mubr.msk.f32.gmra.mrb[26].mxu1 %vm1091_vm3, %v1445_v37  ;;  %v1415_v21 = vadd.f32 %v3043_v5, %v4160_v59  ;;  %v1409_v22 = vpop.f32.mrb[31].mxu0 }
 0x56d   : > { %v1446_v10 = vmin.f32 %v1430_v11, 10.0  ;;  %v1410_v15 = vadd.f32 %v1409_v22, %v4160_v59 }
 0x56e   : > { %v1433_v49 = vmax.f32 %v1415_v21, 0.0 }
 0x56f   : > { %v1432_v16 = vmax.f32 %v1410_v15, 0.0  ;;  %3070 = vmatprep.mubr.msk.f32.mxu1 %vm1091_vm3, %v1446_v10 }
 0x570   : > { %v1449_v17 = vmin.f32 %v1433_v49, 10.0  ;;  %3071 = vmatmul.mubr.msk.f32.gmra.mrb[28].mxu1 %vm1091_vm3, %v1447_v12 }
 0x571   : > { %v1448_v19 = vmin.f32 %v1432_v16, 10.0 }
 0x573   : > { %3073 = vmatprep.mubr.msk.f32.mxu1 %vm1091_vm3, %v1448_v19 }
 0x574   : > { %3074 = vmatmul.mubr.msk.f32.gmra.mrb[30].mxu1 %vm1091_vm3, %v1449_v17 }
 0x575   : > { %3140 = vmatprep.mubr.f32.mxu1 %v4087_v40 }
 0x62b   : > { %v3054_v24 = vpop.f32.mrb[16].mxu1 }
 0x62c   : > { %1688 = vrot.lane.b32.xlu0 %v3054_v24, %s3476_s17  ;;  %v1569_v36 = vpop.f32.mrb[17].mxu1  ;;  %v1657_v56 = vadd.f32 %v3054_v24, %v4261_v42 }
 0x62d   : > { %1686 = vrot.lane.b32.xlu1 %v1569_v36, %s3476_s17  ;;  %v1656_v54 = vadd.f32 %v4261_v42, %v1569_v36 }
 0x62e   : > { %v1729_v48 = vadd.f32 %v1657_v56, %v3803_v39 }
 0x62f   : > { %v3057_v59 = vpop.f32.mrb[18].mxu1  ;;  %v1728_v37 = vadd.f32 %v1656_v54, %v3803_v39 }
 0x630   : > { %1692 = vrot.lane.b32.xlu0 %v3057_v59, %s3476_s17  ;;  %v1579_v62 = vpop.f32.mrb[19].mxu1  ;;  %v1659_v33 = vadd.f32 %v3057_v59, %v4261_v42 }
 0x631   : > { %1748 = vrot.lane.b32.xlu1 %v3057_v59, %s3477_s11  ;;  %v1658_v11 = vadd.f32 %v4261_v42, %v1579_v62 }
 0x633   : > { %v3060_v0 = vpop.f32.mrb[20].mxu1 }
 0x634   : > { %1746 = vrot.lane.b32.xlu0 %v1579_v62, %s3477_s11  ;;  %v1589_v4 = vpop.f32.mrb[21].mxu1  ;;  %v1661_v9 = vadd.f32 %v3060_v0, %v4261_v42 }
 0x635   : > { %1690 = vrot.lane.b32.xlu1 %v1579_v62, %s3476_s17  ;;  %v1660_v15 = vadd.f32 %v4261_v42, %v1589_v4 }
 0x637   : > { %v4201_v51 = vpop.f32.mrb[22].mxu1 }
 0x638   : > { %1752 = vrot.lane.b32.xlu0 %v3060_v0, %s3477_s11  ;;  %v4204_v40 = vpop.f32.mrb[23].mxu1 }
 0x639   : > { %1696 = vrot.lane.b32.xlu1 %v3060_v0, %s3476_s17 }
 0x63b   : > { %v4207_v25 = vpop.f32.mrb[24].mxu1 }
 0x63c   : > { %1756 = vrot.lane.b32.xlu0 %v4201_v51, %s3477_s11  ;;  %v4211_v23 = vpop.f32.mrb[25].mxu1 }
 0x63d   : > { %1750 = vrot.lane.b32.xlu1 %v1589_v4, %s3477_s11 }
 0x63f   : > { %v4214_v26 = vpop.f32.mrb[26].mxu1 }
 0x640   : > { %1754 = vrot.lane.b32.xlu0 %v4204_v40, %s3477_s11  ;;  %v4218_v30 = vpop.f32.mrb[27].mxu1 }
 0x641   : > { %1694 = vrot.lane.b32.xlu1 %v1589_v4, %s3476_s17  ;;  %v1663_v4 = vadd.f32 %v4201_v51, %v4261_v42 }
 0x643   : > { %v4221_v53 = vpop.f32.mrb[28].mxu1 }
 0x644   : > { %1760 = vrot.lane.b32.xlu0 %v4207_v25, %s3477_s11  ;;  %v4225_v52 = vpop.f32.mrb[29].mxu1 }
 0x645   : > { %1700 = vrot.lane.b32.xlu1 %v4201_v51, %s3476_s17 }
 0x647   : > { %v4229_v27 = vpop.f32.mrb[30].mxu1 }
 0x648   : > { %1758 = vrot.lane.b32.xlu0 %v4211_v23, %s3477_s11  ;;  %v4233_v13 = vpop.f32.mrb[31].mxu1 }
 0x649   : > { %1698 = vrot.lane.b32.xlu1 %v4204_v40, %s3476_s17 }
 0x64c   : > { %1764 = vrot.lane.b32.xlu0 %v4214_v26, %s3477_s11 }
 0x64d   : > { %1704 = vrot.lane.b32.xlu1 %v4207_v25, %s3476_s17 }
 0x650   : > { %1762 = vrot.lane.b32.xlu0 %v4218_v30, %s3477_s11 }
 0x651   : > { %1702 = vrot.lane.b32.xlu1 %v4211_v23, %s3476_s17 }
 0x654   : > { %1768 = vrot.lane.b32.xlu0 %v4221_v53, %s3477_s11 }
 0x655   : > { %1708 = vrot.lane.b32.xlu1 %v4214_v26, %s3476_s17 }
 0x658   : > { %1766 = vrot.lane.b32.xlu0 %v4225_v52, %s3477_s11 }
 0x659   : > { %1706 = vrot.lane.b32.xlu1 %v4218_v30, %s3476_s17 }
 0x65c   : > { %1770 = vrot.lane.b32.xlu0 %v4233_v13, %s3477_s11 }
 0x65d   : > { %1710 = vrot.lane.b32.xlu1 %v4225_v52, %s3476_s17 }
 0x660   : > { %1772 = vrot.lane.b32.xlu0 %v4229_v27, %s3477_s11 }
 0x661   : > { %1712 = vrot.lane.b32.xlu1 %v4221_v53, %s3476_s17 }
 0x69e   : > { %v1689_v34 = vpop.permute.xlu0 %1688 }
 0x69f   : > { %v1687_v44 = vpop.permute.xlu1 %1686  ;;  %v1731_v6 = vadd.f32 %v1689_v34, %v1659_v33 }
 0x6a0   : > { %v1730_v22 = vadd.f32 %v1687_v44, %v1658_v11 }
 0x6a2   : > { %v1693_v28 = vpop.permute.xlu0 %1692 }
 0x6a3   : > { %v1749_v47 = vpop.permute.xlu1 %1748  ;;  %v1733_v12 = vadd.f32 %v1693_v28, %v1661_v9 }
 0x6a4   : > { %v4267_v61 = vadd.f32 %v1749_v47, %v1729_v48 }
 0x6a6   : > { %v1747_v3 = vpop.permute.xlu0 %1746  ;;  %v2744_v38 = vclamps-f32 %v4267_v61, 10.0 }
 0x6a7   : > { %v1691_v35 = vpop.permute.xlu1 %1690  ;;  %v4275_v5 = vadd.f32 %v1747_v3, %v1728_v37  ;;  %v1662_v37 = vadd.f32 %v4261_v42, %v4204_v40 }
 0x6a8   : > { %v1851_v39 = vsel %vm860_vm2, %v2744_v38, 0.0  ;;  %v1732_v59 = vadd.f32 %v1691_v35, %v1660_v15 }
 0x6a9   : > { %v2743_v19 = vclamps-f32 %v4275_v5, 10.0 }
 0x6aa   : > { %v1753_v8 = vpop.permute.xlu0 %1752 }
 0x6ab   : > { %v4272_v7 = vadd.f32 %v1753_v8, %v1731_v6  ;;  %v1697_v32 = vpop.permute.xlu1 %1696  ;;  %v1836_v47 = vsel %vm860_vm2, %v2743_v19, 0.0 }
 0x6ac   : > { %v1735_v3 = vadd.f32 %v1697_v32, %v1663_v4  ;;  %v1664_v4 = vadd.f32 %v4261_v42, %v4211_v23 }
 0x6ad   : > { %v2746_v21 = vclamps-f32 %v4272_v7, 10.0 }
 0x6ae   : > { %v1757_v10 = vpop.permute.xlu0 %1756 }
 0x6af   : > { %v1852_v49 = vsel %vm860_vm2, %v2746_v21, 0.0  ;;  %v4285_v16 = vadd.f32 %v1757_v10, %v1733_v12  ;;  %v1751_v17 = vpop.permute.xlu1 %1750 }
 0x6b0   : > { %v1853_v24 = vadd.f32 %v1852_v49, %v1851_v39  ;;  %v4288_v36 = vadd.f32 %v1751_v17, %v1730_v22  ;;  %v1665_v39 = vadd.f32 %v4207_v25, %v4261_v42 }
 0x6b1   : > { %v2748_v62 = vclamps-f32 %v4285_v16, 10.0 }
 0x6b2   : > { %v2745_v0 = vclamps-f32 %v4288_v36, 10.0  ;;  %v1755_v34 = vpop.permute.xlu0 %1754 }
 0x6b3   : > { %v1854_v44 = vsel %vm860_vm2, %v2748_v62, 0.0  ;;  %v4297_v56 = vadd.f32 %v1755_v34, %v1732_v59  ;;  %v1695_v28 = vpop.permute.xlu1 %1694 }
 0x6b4   : > { %v1855_v48 = vadd.f32 %v1854_v44, %v1853_v24  ;;  %v1837_v54 = vsel %vm860_vm2, %v2745_v0, 0.0  ;;  %v1734_v12 = vadd.f32 %v1695_v28, %v1662_v37 }
 0x6b5   : > { %v1838_v33 = vadd.f32 %v1837_v54, %v1836_v47  ;;  %v2747_v51 = vclamps-f32 %v4297_v56, 10.0 }
 0x6b6   : > { %v1761_v35 = vpop.permute.xlu0 %1760 }
 0x6b7   : > { %v1839_v6 = vsel %vm860_vm2, %v2747_v51, 0.0  ;;  %v4311_v8 = vadd.f32 %v1761_v35, %v1735_v3  ;;  %v1701_v9 = vpop.permute.xlu1 %1700 }
 0x6b8   : > { %v1840_v11 = vadd.f32 %v1839_v6, %v1838_v33  ;;  %v1737_v40 = vadd.f32 %v1701_v9, %v1665_v39  ;;  %v1667_v33 = vadd.f32 %v4214_v26, %v4261_v42  ;;  %v1668_v26 = vadd.f32 %v4261_v42, %v4225_v52 }
 0x6b9   : > { %v2750_v22 = vclamps-f32 %v4311_v8, 10.0 }
 0x6ba   : > { %v1759_v10 = vpop.permute.xlu0 %1758 }
 0x6bb   : > { %v1856_v32 = vsel %vm860_vm2, %v2750_v22, 0.0  ;;  %v4319_v15 = vadd.f32 %v1759_v10, %v1734_v12  ;;  %v1699_v49 = vpop.permute.xlu1 %1698 }
 0x6bc   : > { %v1857_v17 = vadd.f32 %v1856_v32, %v1855_v48  ;;  %v1736_v25 = vadd.f32 %v1699_v49, %v1664_v4 }
 0x6bd   : > { %v2749_v24 = vclamps-f32 %v4319_v15, 10.0 }
 0x6be   : > { %v1765_v59 = vpop.permute.xlu0 %1764 }
 0x6bf   : > { %v1841_v34 = vsel %vm860_vm2, %v2749_v24, 0.0  ;;  %v4327_v44 = vadd.f32 %v1765_v59, %v1737_v40  ;;  %v1705_v28 = vpop.permute.xlu1 %1704 }
 0x6c0   : > { %v1842_v47 = vadd.f32 %v1841_v34, %v1840_v11  ;;  %v1739_v9 = vadd.f32 %v1705_v28, %v1667_v33  ;;  %v1666_v11 = vadd.f32 %v4261_v42, %v4218_v30  ;;  %v1669_v33 = vadd.f32 %v4221_v53, %v4261_v42 }
 0x6c1   : > { %v2752_v54 = vclamps-f32 %v4327_v44, 10.0 }
 0x6c2   : > { %v1763_v3 = vpop.permute.xlu0 %1762 }
 0x6c3   : > { %v1858_v48 = vsel %vm860_vm2, %v2752_v54, 0.0  ;;  %v1796_v35 = vadd.f32 %v1763_v3, %v1736_v25  ;;  %v1703_v6 = vpop.permute.xlu1 %1702 }
 0x6c4   : > { %v1859_v37 = vadd.f32 %v1858_v48, %v1857_v17  ;;  %v1738_v40 = vadd.f32 %v1703_v6, %v1666_v11  ;;  %v1670_v48 = vadd.f32 %v4261_v42, %v4233_v13 }
 0x6c5   : > { %v2751_v23 = vclamps-f32 %v1796_v35, 10.0 }
 0x6c6   : > { %v1769_v12 = vpop.permute.xlu0 %1768 }
 0x6c7   : > { %v1843_v10 = vsel %vm860_vm2, %v2751_v23, 0.0  ;;  %v4338_v32 = vadd.f32 %v1769_v12, %v1739_v9  ;;  %v1709_v39 = vpop.permute.xlu1 %1708 }
 0x6c8   : > { %v1844_v49 = vadd.f32 %v1843_v10, %v1842_v47  ;;  %v1741_v10 = vadd.f32 %v1709_v39, %v1669_v33 }
 0x6c9   : > { %v2754_v59 = vclamps-f32 %v4338_v32, 10.0 }
 0x6ca   : > { %v1767_v34 = vpop.permute.xlu0 %1766 }
 0x6cb   : > { %v1860_v17 = vsel %vm860_vm2, %v2754_v59, 0.0  ;;  %v1798_v4 = vadd.f32 %v1767_v34, %v1738_v40  ;;  %v1707_v28 = vpop.permute.xlu1 %1706 }
 0x6cc   : > { %v1861_v25 = vadd.f32 %v1860_v17, %v1859_v37  ;;  %v1740_v3 = vadd.f32 %v1707_v28, %v1668_v26  ;;  %v1671_v37 = vadd.f32 %v4229_v27, %v4261_v42 }
 0x6cd   : > { %v2753_v30 = vclamps-f32 %v1798_v4, 10.0 }
 0x6ce   : > { %v1771_v47 = vpop.permute.xlu0 %1770 }
 0x6cf   : > { %v1845_v35 = vsel %vm860_vm2, %v2753_v30, 0.0  ;;  %v1800_v6 = vadd.f32 %v1771_v47, %v1740_v3  ;;  %v1711_v52 = vpop.permute.xlu1 %1710 }
 0x6d0   : > { %v1846_v9 = vadd.f32 %v1845_v35, %v1844_v49  ;;  %v1742_v12 = vadd.f32 %v1711_v52, %v1670_v48 }
 0x6d1   : > { %v2755_v11 = vclamps-f32 %v1800_v6, 10.0 }
 0x6d2   : > { %v1802_v40 = vadd.f32 %v1742_v12, %v3898_v60  ;;  %v1773_v34 = vpop.permute.xlu0 %1772 }
 0x6d3   : > { %v1847_v13 = vsel %vm860_vm2, %v2755_v11, 0.0  ;;  %v1801_v26 = vadd.f32 %v1773_v34, %v1741_v10  ;;  %v1713_v17 = vpop.permute.xlu1 %1712 }
 0x6d4   : > { %v1848_v4 = vadd.f32 %v1847_v13, %v1846_v9  ;;  %v2757_v53 = vclamps-f32 %v1802_v40, 10.0  ;;  %v1743_v28 = vadd.f32 %v1713_v17, %v1671_v37 }
 0x6d5   : > { %v2756_v57 = vclamps-f32 %v1801_v26, 10.0 }
 0x6d6   : > { %v1849_v3 = vsel %vm860_vm2, %v2757_v53, 0.0  ;;  %v1803_v49 = vadd.f32 %v1743_v28, %v3898_v60 }
 0x6d7   : > { %v1850_v39 = vadd.f32 %v1849_v3, %v1848_v4  ;;  %v1862_v48 = vsel %vm860_vm2, %v2756_v57, 0.0 }
 0x6d8   : > { %v1863_v47 = vadd.f32 %v1862_v48, %v1861_v25  ;;  %v2758_v42 = vclamps-f32 %v1803_v49, 10.0 }
 0x6d9   : > { %v1866_v27 = vmul.f32 0.125, %v1850_v39 }
 0x6da   : > { %v1864_v56 = vsel %vm860_vm2, %v2758_v42, 0.0 }
 0x6db   : > { %v4360_v33 = vsub.f32 %v2743_v19, %v1866_v27  ;;  %v4364_v35 = vsub.f32 %v2745_v0, %v1866_v27  ;;  %v4368_v6 = vsub.f32 %v2747_v51, %v1866_v27  ;;  %v4372_v60 = vsub.f32 %v2749_v24, %v1866_v27 }
 0x6dc   : > { %v4374_v52 = vsub.f32 %v2751_v23, %v1866_v27  ;;  %v4376_v25 = vsub.f32 %v2753_v30, %v1866_v27  ;;  %v4378_v9 = vsub.f32 %v2755_v11, %v1866_v27  ;;  %v4380_v5 = vsub.f32 %v2757_v53, %v1866_v27 }
 0x6dd   : > { %v1884_v19 = vmul.f32 %v4360_v33, %v4360_v33  ;;  %v1886_v36 = vmul.f32 %v4364_v35, %v4364_v35  ;;  %v1888_v0 = vmul.f32 %v4368_v6, %v4368_v6  ;;  %v1890_v51 = vmul.f32 %v4372_v60, %v4372_v60 }
 0x6de   : > { %v1892_v23 = vmul.f32 %v4374_v52, %v4374_v52  ;;  %v1894_v30 = vmul.f32 %v4376_v25, %v4376_v25  ;;  %v1865_v11 = vadd.f32 %v1864_v56, %v1863_v47  ;;  %v1896_v40 = vmul.f32 %v4378_v9, %v4378_v9 }
 0x6df   : > { %v1900_v15 = vsel %vm860_vm2, %v1884_v19, 0.0  ;;  %v1901_v24 = vsel %vm860_vm2, %v1886_v36, 0.0  ;;  %v1903_v10 = vsel %vm860_vm2, %v1888_v0, 0.0  ;;  %v1905_v34 = vsel %vm860_vm2, %v1890_v51, 0.0 }
 0x6e0   : > { %v1902_v12 = vadd.f32 %v1901_v24, %v1900_v15  ;;  %v1867_v13 = vmul.f32 0.125, %v1865_v11  ;;  %v1898_v26 = vmul.f32 %v4380_v5, %v4380_v5  ;;  %v1907_v4 = vsel %vm860_vm2, %v1892_v23, 0.0 }
 0x6e1   : > { %v1909_v53 = vsel %vm860_vm2, %v1894_v30, 0.0 }
 0x6e2   : > { %v1904_v37 = vadd.f32 %v1903_v10, %v1902_v12  ;;  %v4407_v28 = vsub.f32 %v2744_v38, %v1867_v13  ;;  %v4411_v3 = vsub.f32 %v2746_v21, %v1867_v13  ;;  %v4415_v49 = vsub.f32 %v2748_v62, %v1867_v13 }
 0x6e3   : > { %v4419_v39 = vsub.f32 %v2750_v22, %v1867_v13  ;;  %v4423_v47 = vsub.f32 %v2752_v54, %v1867_v13  ;;  %v4427_v61 = vsub.f32 %v2754_v59, %v1867_v13  ;;  %v4429_v38 = vsub.f32 %v2756_v57, %v1867_v13 }
 0x6e4   : > { %v1906_v17 = vadd.f32 %v1905_v34, %v1904_v37  ;;  %v4431_v7 = vsub.f32 %v2758_v42, %v1867_v13  ;;  %v1885_v21 = vmul.f32 %v4407_v28, %v4407_v28  ;;  %v1887_v16 = vmul.f32 %v4411_v3, %v4411_v3 }
 0x6e5   : > { %v1889_v62 = vmul.f32 %v4415_v49, %v4415_v49  ;;  %v1911_v22 = vsel %vm860_vm2, %v1896_v40, 0.0  ;;  %v1891_v44 = vmul.f32 %v4419_v39, %v4419_v39  ;;  %v1913_v27 = vsel %vm860_vm2, %v1898_v26, 0.0 }
 0x6e6   : > { %v1908_v48 = vadd.f32 %v1907_v4, %v1906_v17  ;;  %v1915_v57 = vsel %vm860_vm2, %v1885_v21, 0.0  ;;  %v1916_v54 = vsel %vm860_vm2, %v1887_v16, 0.0  ;;  %v1893_v42 = vmul.f32 %v4423_v47, %v4423_v47 }
 0x6e7   : > { %v1917_v59 = vadd.f32 %v1916_v54, %v1915_v57  ;;  %v1918_v19 = vsel %vm860_vm2, %v1889_v62, 0.0  ;;  %v1895_v56 = vmul.f32 %v4427_v61, %v4427_v61  ;;  %v1920_v51 = vsel %vm860_vm2, %v1891_v44, 0.0  ;;  %v2014_v54 = vld [vmem:[#allocation7] sm:$0xff] }
 0x6e8   : > { %v1910_v8 = vadd.f32 %v1909_v53, %v1908_v48  ;;  %v1897_v23 = vmul.f32 %v4429_v38, %v4429_v38  ;;  %v1922_v30 = vsel %vm860_vm2, %v1893_v42, 0.0  ;;  %v1899_v11 = vmul.f32 %v4431_v7, %v4431_v7  ;;  %v2017_v42 = vld [vmem:[#allocation7 + $0x18] sm:$0xff] }
 0x6e9   : > { %v1919_v0 = vadd.f32 %v1918_v19, %v1917_v59  ;;  %v1924_v37 = vsel %vm860_vm2, %v1895_v56, 0.0  ;;  %v1939_v16 = vrot.slane %v4150_v20, %v963_v43  ;;  %v2016_v59 = vld [vmem:[#allocation7 + $0x10] sm:$0xff] }
 0x6ea   : > { %v1912_v32 = vadd.f32 %v1911_v22, %v1910_v8  ;;  %v1926_v34 = vsel %vm860_vm2, %v1897_v23, 0.0  ;;  %v1928_v26 = vsel %vm860_vm2, %v1899_v11, 0.0  ;;  %v1977_v22 = vrot.slane %v4150_v20, %v1001_v46 }
 0x6eb   : > { %v1921_v24 = vadd.f32 %v1920_v51, %v1919_v0  ;;  %v3227_v43 = vpack.c.bf16 %v2017_v42, %v2016_v59 }
 0x6ec   : > { %v1914_v36 = vadd.f32 %v1913_v27, %v1912_v32  ;;  %v2015_v32 = vld [vmem:[#allocation7 + $0x8] sm:$0xff] }
 0x6ed   : > { %v1923_v10 = vadd.f32 %v1922_v30, %v1921_v24  ;;  %v3223_v27 = vpack.c.bf16 %v2015_v32, %v2014_v54 }
 0x6ee   : > { %v1930_v15 = vmul.f32 0.125, %v1914_v36 }
 0x6ef   : > { %v1925_v40 = vadd.f32 %v1924_v37, %v1923_v10  ;;  %3224 = vmatprep.subr.bf16.mxu0 %v3223_v27 }
 0x6f0   : > { %v1932_v12 = vadd.f32 1e-05, %v1930_v15  ;;  %3226 = vmatpush3.bf16.msra.mxu0 %v3223_v27 }
 0x6f1   : > { %v1927_v13 = vadd.f32 %v1926_v34, %v1925_v40  ;;  %3228 = vmatprep.subr.bf16.mxu0 %v3227_v43 }
 0x6f2   : > { %3329 = vrsqrt.f32 %v1932_v12 }
 0x6f3   : > { %v1929_v17 = vadd.f32 %v1928_v26, %v1927_v13 }
 0x6f4   : > { %3230 = vmatpush3.bf16.msra.mxu0 %v3227_v43 }
 0x6f5   : > { %v1931_v4 = vmul.f32 0.125, %v1929_v17 }
 0x6f7   : > { %v1933_v53 = vadd.f32 1e-05, %v1931_v4 }
 0x6f9   : > { %3331 = vrsqrt.f32 %v1933_v53 }
 0x6fc   : > { %v3330_v48 = vpop.eup %3329 }
 0x6fd   : > { %1942 = vrot.lane.b32.xlu1 %v3330_v48, %s3477_s11 }
 0x703   : > { %v3332_v21 = vpop.eup %3331 }
 0x704   : > { %1944 = vrot.lane.b32.xlu0 %v3332_v21, %s3477_s11 }
 0x76f   : > { %v1943_v62 = vpop.permute.xlu1 %1942 }
 0x770   : > { %v1948_v8 = vmul.f32 %v1943_v62, %v1939_v16 }
 0x772   : > { %1952 = vrot.lane.b32.xlu1 %v1948_v8, %s3476_s17 }
 0x776   : > { %1979 = vrot.lane.b32.xlu1 %v1977_v22, %s3476_s17  ;;  %v1945_v44 = vpop.permute.xlu0 %1944 }
 0x777   : > { %v1949_v57 = vmul.f32 %v1945_v44, %v1939_v16 }
 0x779   : > { %1954 = vrot.lane.b32.xlu0 %v1949_v57, %s3476_s17 }
 0x7e4   : > { %v1953_v19 = vpop.permute.xlu1 %1952 }
 0x7e5   : > { %v1958_v36 = vmul.f32 %v1953_v19, %v4360_v33  ;;  %v1960_v56 = vmul.f32 %v1953_v19, %v4364_v35  ;;  %v1962_v24 = vmul.f32 %v1953_v19, %v4368_v6  ;;  %v1964_v37 = vmul.f32 %v1953_v19, %v4372_v60 }
 0x7e6   : > { %v1966_v6 = vmul.f32 %v1953_v19, %v4374_v52  ;;  %v1968_v53 = vmul.f32 %v1953_v19, %v4376_v25  ;;  %v1970_v62 = vmul.f32 %v1953_v19, %v4378_v9  ;;  %v1972_v57 = vmul.f32 %v1953_v19, %v4380_v5 }
 0x7e8   : > { %v1980_v46 = vpop.permute.xlu1 %1979 }
 0x7e9   : > { %v1982_v0 = vadd.f32 %v1980_v46, %v1958_v36  ;;  %v1984_v15 = vadd.f32 %v1980_v46, %v1960_v56  ;;  %v1986_v11 = vadd.f32 %v1980_v46, %v1962_v24  ;;  %v1988_v40 = vadd.f32 %v1980_v46, %v1964_v37 }
 0x7ea   : > { %v1992_v48 = vadd.f32 %v1980_v46, %v1968_v53  ;;  %v1994_v8 = vadd.f32 %v1980_v46, %v1970_v62  ;;  %v1996_v54 = vadd.f32 %v1980_v46, %v1972_v57 }
 0x7eb   : > { %v1998_v51 = vmax.f32 %v1982_v0, 0.0  ;;  %v1955_v23 = vpop.permute.xlu0 %1954  ;;  %v2000_v12 = vmax.f32 %v1984_v15, 0.0  ;;  %v2002_v13 = vmax.f32 %v1986_v11, 0.0  ;;  %v2004_v4 = vmax.f32 %v1988_v40, 0.0 }
 0x7ec   : > { %v1959_v30 = vmul.f32 %v1955_v23, %v4407_v28  ;;  %v1961_v10 = vmul.f32 %v1955_v23, %v4411_v3  ;;  %v1963_v26 = vmul.f32 %v1955_v23, %v4415_v49  ;;  %v1990_v28 = vadd.f32 %v1980_v46, %v1966_v6 }
 0x7ed   : > { %2034 = vrot.lane.b32.xlu0 %v1998_v51, %s3477_s11  ;;  %v1965_v60 = vmul.f32 %v1955_v23, %v4419_v39  ;;  %v1967_v16 = vmul.f32 %v1955_v23, %v4423_v47  ;;  %v2008_v25 = vmax.f32 %v1992_v48, 0.0  ;;  %v1969_v44 = vmul.f32 %v1955_v23, %v4427_v61 }
 0x7ee   : > { %v1983_v33 = vadd.f32 %v1980_v46, %v1959_v30  ;;  %v1985_v34 = vadd.f32 %v1980_v46, %v1961_v10  ;;  %v1987_v17 = vadd.f32 %v1980_v46, %v1963_v26  ;;  %v2006_v52 = vmax.f32 %v1990_v28, 0.0 }
 0x7ef   : > { %v1989_v21 = vadd.f32 %v1980_v46, %v1965_v60  ;;  %v1991_v22 = vadd.f32 %v1980_v46, %v1967_v16  ;;  %v1993_v32 = vadd.f32 %v1980_v46, %v1969_v44  ;;  %v2010_v9 = vmax.f32 %v1994_v8, 0.0 }
 0x7f0   : > { %v1999_v35 = vmax.f32 %v1983_v33, 0.0  ;;  %v2001_v3 = vmax.f32 %v1985_v34, 0.0  ;;  %v2003_v49 = vmax.f32 %v1987_v17, 0.0  ;;  %v1971_v59 = vmul.f32 %v1955_v23, %v4429_v38 }
 0x7f1   : > { %2038 = vrot.lane.b32.xlu0 %v2000_v12, %s3477_s11  ;;  %v2005_v39 = vmax.f32 %v1989_v21, 0.0  ;;  %v2007_v47 = vmax.f32 %v1991_v22, 0.0  ;;  %v2009_v27 = vmax.f32 %v1993_v32, 0.0  ;;  %v2012_v43 = vmax.f32 %v1996_v54, 0.0  ;;  %v3334_v32 = vld [vmem:[%s4084_s28 + $0x10] sm:$0xff] }
 0x7f2   : > { %2036 = vrot.lane.b32.xlu1 %v1999_v35, %s3477_s11  ;;  %v1995_v42 = vadd.f32 %v1980_v46, %v1971_v59  ;;  %v1973_v61 = vmul.f32 %v1955_v23, %v4431_v7  ;;  %v3336_v59 = vld [vmem:[%s4084_s28 + $0x20] sm:$0xff] }
 0x7f4   : > { %v2011_v5 = vmax.f32 %v1995_v42, 0.0  ;;  %v1997_v19 = vadd.f32 %v1980_v46, %v1973_v61 }
 0x7f5   : > { %2042 = vrot.lane.b32.xlu0 %v2002_v13, %s3477_s11 }
 0x7f6   : > { %2040 = vrot.lane.b32.xlu1 %v2001_v3, %s3477_s11  ;;  %v2013_v36 = vmax.f32 %v1997_v19, 0.0 }
 0x7f9   : > { %2046 = vrot.lane.b32.xlu0 %v2004_v4, %s3477_s11 }
 0x7fa   : > { %2044 = vrot.lane.b32.xlu1 %v2003_v49, %s3477_s11 }
 0x7fd   : > { %2050 = vrot.lane.b32.xlu0 %v2006_v52, %s3477_s11 }
 0x7fe   : > { %2048 = vrot.lane.b32.xlu1 %v2005_v39, %s3477_s11 }
 0x801   : > { %2054 = vrot.lane.b32.xlu0 %v2008_v25, %s3477_s11 }
 0x802   : > { %2052 = vrot.lane.b32.xlu1 %v2007_v47, %s3477_s11  ;;  %v3333_v47 = vld [vmem:[%s4084_s28 + $0x8] sm:$0xff] }
 0x805   : > { %2058 = vrot.lane.b32.xlu0 %v2010_v9, %s3477_s11  ;;  %v3335_v9 = vld [vmem:[%s4084_s28 + $0x18] sm:$0xff] }
 0x806   : > { %2056 = vrot.lane.b32.xlu1 %v2009_v27, %s3477_s11 }
 0x809   : > { %2062 = vrot.lane.b32.xlu0 %v2012_v43, %s3477_s11 }
 0x80a   : > { %2060 = vrot.lane.b32.xlu1 %v2011_v5, %s3477_s11 }
 0x80e   : > { %2064 = vrot.lane.b32.xlu1 %v2013_v36, %s3477_s11 }
 0x85f   : > { %v2035_v38 = vpop.permute.xlu0 %2034 }
 0x860   : > { %3084 = vmatprep.mubr.msk.f32.mxu0 %vm1091_vm3, %v2035_v38 }
 0x863   : > { %v2039_v0 = vpop.permute.xlu0 %2038 }
 0x864   : > { %v2037_v56 = vpop.permute.xlu1 %2036 }
 0x865   : > { %3085 = vmatmul.mubr.msk.f32.vlgmr.msra.gmra.mrb[32].mxu0 %vm1091_vm3, %v2037_v56 }
 0x866   : > { %3087 = vmatprep.mubr.msk.f32.mxu0 %vm1091_vm3, %v2039_v0 }
 0x867   : > { %v2043_v51 = vpop.permute.xlu0 %2042 }
 0x868   : > { %v2041_v7 = vpop.permute.xlu1 %2040 }
 0x869   : > { %3088 = vmatmul.mubr.msk.f32.gmra.mrb[34].mxu0 %vm1091_vm3, %v2041_v7 }
 0x86a   : > { %3090 = vmatprep.mubr.msk.f32.mxu0 %vm1091_vm3, %v2043_v51 }
 0x86b   : > { %v2047_v15 = vpop.permute.xlu0 %2046 }
 0x86c   : > { %v2045_v46 = vpop.permute.xlu1 %2044 }
 0x86d   : > { %3091 = vmatmul.mubr.msk.f32.gmra.mrb[36].mxu0 %vm1091_vm3, %v2045_v46 }
 0x86e   : > { %3093 = vmatprep.mubr.msk.f32.mxu0 %vm1091_vm3, %v2047_v15 }
 0x86f   : > { %v2051_v24 = vpop.permute.xlu0 %2050 }
 0x870   : > { %v2049_v23 = vpop.permute.xlu1 %2048 }
 0x871   : > { %3094 = vmatmul.mubr.msk.f32.gmra.mrb[38].mxu0 %vm1091_vm3, %v2049_v23 }
 0x872   : > { %3096 = vmatprep.mubr.msk.f32.mxu0 %vm1091_vm3, %v2051_v24 }
 0x873   : > { %v2055_v30 = vpop.permute.xlu0 %2054 }
 0x874   : > { %v2053_v12 = vpop.permute.xlu1 %2052 }
 0x875   : > { %3097 = vmatmul.mubr.msk.f32.gmra.mrb[40].mxu0 %vm1091_vm3, %v2053_v12 }
 0x876   : > { %3099 = vmatprep.mubr.msk.f32.mxu0 %vm1091_vm3, %v2055_v30 }
 0x877   : > { %v2059_v10 = vpop.permute.xlu0 %2058 }
 0x878   : > { %v2057_v11 = vpop.permute.xlu1 %2056 }
 0x879   : > { %3100 = vmatmul.mubr.msk.f32.gmra.mrb[42].mxu0 %vm1091_vm3, %v2057_v11 }
 0x87a   : > { %3102 = vmatprep.mubr.msk.f32.mxu0 %vm1091_vm3, %v2059_v10 }
 0x87b   : > { %v2063_v37 = vpop.permute.xlu0 %2062 }
 0x87c   : > { %v2061_v33 = vpop.permute.xlu1 %2060 }
 0x87d   : > { %3103 = vmatmul.mubr.msk.f32.gmra.mrb[44].mxu0 %vm1091_vm3, %v2061_v33 }
 0x87e   : > { %3105 = vmatprep.mubr.msk.f32.mxu0 %vm1091_vm3, %v2063_v37 }
 0x880   : > { %v2065_v40 = vpop.permute.xlu1 %2064 }
 0x881   : > { %3106 = vmatmul.mubr.msk.f32.gmra.mrb[46].mxu0 %vm1091_vm3, %v2065_v40 }
 0x938   : > { %v3086_v35 = vpop.f32.mrb[32].mxu0 }
 0x939   : > { %v2164_v34 = vpop.f32.mrb[33].mxu0 }
 0x93a   : > { %v3231_v13 = vpack.c.bf16 %v3086_v35, %v2164_v34 }
 0x93c   : > { %v3089_v26 = vpop.f32.mrb[34].mxu0  ;;  %3232 = vmatprep.subr.bf16.mxu1 %v3231_v13 }
 0x93d   : > { %v2174_v6 = vpop.f32.mrb[35].mxu0  ;;  %3234 = vmatpush3.bf16.msra.mxu1 %v3231_v13 }
 0x93e   : > { %v3235_v28 = vpack.c.bf16 %v3089_v26, %v2174_v6 }
 0x940   : > { %v3092_v3 = vpop.f32.mrb[36].mxu0  ;;  %3236 = vmatprep.subr.bf16.mxu1 %v3235_v28 }
 0x941   : > { %v2184_v17 = vpop.f32.mrb[37].mxu0  ;;  %3238 = vmatpush3.bf16.msra.mxu1 %v3235_v28 }
 0x942   : > { %v3239_v4 = vpack.c.bf16 %v3092_v3, %v2184_v17 }
 0x944   : > { %v3095_v60 = vpop.f32.mrb[38].mxu0  ;;  %3240 = vmatprep.subr.bf16.mxu1 %v3239_v4 }
 0x945   : > { %v2194_v53 = vpop.f32.mrb[39].mxu0  ;;  %3242 = vmatpush3.bf16.msra.mxu1 %v3239_v4 }
 0x946   : > { %v3243_v48 = vpack.c.bf16 %v3095_v60, %v2194_v53 }
 0x948   : > { %v3098_v49 = vpop.f32.mrb[40].mxu0  ;;  %3244 = vmatprep.subr.bf16.mxu1 %v3243_v48 }
 0x949   : > { %v2204_v21 = vpop.f32.mrb[41].mxu0  ;;  %3246 = vmatpush3.bf16.msra.mxu1 %v3243_v48 }
 0x94a   : > { %v3247_v52 = vpack.c.bf16 %v3098_v49, %v2204_v21 }
 0x94c   : > { %v3101_v16 = vpop.f32.mrb[42].mxu0  ;;  %3248 = vmatprep.subr.bf16.mxu1 %v3247_v52 }
 0x94d   : > { %v2214_v62 = vpop.f32.mrb[43].mxu0  ;;  %3250 = vmatpush3.bf16.msra.mxu1 %v3247_v52 }
 0x94e   : > { %v3251_v8 = vpack.c.bf16 %v3101_v16, %v2214_v62 }
 0x950   : > { %v3104_v39 = vpop.f32.mrb[44].mxu0  ;;  %3252 = vmatprep.subr.bf16.mxu1 %v3251_v8 }
 0x951   : > { %v2224_v22 = vpop.f32.mrb[45].mxu0  ;;  %3254 = vmatpush3.bf16.msra.mxu1 %v3251_v8 }
 0x952   : > { %v3255_v25 = vpack.c.bf16 %v3104_v39, %v2224_v22 }
 0x954   : > { %v3107_v44 = vpop.f32.mrb[46].mxu0  ;;  %3256 = vmatprep.subr.bf16.mxu1 %v3255_v25 }
 0x955   : > { %v2234_v57 = vpop.f32.mrb[47].mxu0  ;;  %3258 = vmatpush3.bf16.msra.mxu1 %v3255_v25 }
 0x956   : > { %v3259_v54 = vpack.c.bf16 %v3107_v44, %v2234_v57 }
 0x958   : > { %3260 = vmatprep.subr.bf16.mxu1 %v3259_v54 }
 0x959   : > { %3262 = vmatpush3.bf16.msra.mxu1 %v3259_v54 }
 0x95c   : > { %3141 = vmatmul.mubr.f32.vlgmr.msra.gmra.mrb[32].mxu1 %v3333_v47 }
 0x95d   : > { %3143 = vmatprep.mubr.f32.mxu1 %v3334_v32 }
 0x960   : > { %3144 = vmatmul.mubr.f32.gmra.mrb[34].mxu1 %v3335_v9 }
 0x961   : > { %3146 = vmatprep.mubr.f32.mxu1 %v3336_v59 }
 0x964   : > { %3147 = vmatmul.mubr.f32.gmra.mrb[36].mxu1 %v4107_v50  ;;  %v2456_v50 = vld [vmem:[%s4602_s8] sm:$0xff] }
 0x965   : > { %3149 = vmatprep.mubr.f32.mxu1 %v4110_v41  ;;  %v2457_v41 = vld [vmem:[%s4602_s8 + $0x8] sm:$0xff] }
 0x968   : > { %3150 = vmatmul.mubr.f32.gmra.mrb[38].mxu1 %v4115_v14  ;;  %v3263_v14 = vpack.c.bf16 %v2457_v41, %v2456_v50 }
 0x969   : > { %3152 = vmatprep.mubr.f32.mxu1 %v4118_v18  ;;  %v2458_v18 = vld [vmem:[%s4602_s8 + $0x10] sm:$0xff] }
 0x96a   : > { %3264 = vmatprep.subr.bf16.mxu0 %v3263_v14 }
 0x96b   : > { %3266 = vmatpush3.bf16.msra.mxu0 %v3263_v14 }
 0x96c   : > { %3153 = vmatmul.mubr.f32.gmra.mrb[40].mxu1 %v4123_v29  ;;  %v2459_v29 = vld [vmem:[%s4602_s8 + $0x18] sm:$0xff] }
 0x96d   : > { %3155 = vmatprep.mubr.f32.mxu1 %v4126_v55  ;;  %v3267_v55 = vpack.c.bf16 %v2459_v29, %v2458_v18 }
 0x96f   : > { %3268 = vmatprep.subr.bf16.mxu0 %v3267_v55 }
 0x970   : > { %3156 = vmatmul.mubr.f32.gmra.mrb[42].mxu1 %v4131_v58  ;;  %3270 = vmatpush3.bf16.msra.mxu0 %v3267_v55  ;;  %v4609_v58 = vsub.s32 3, %v3690_v2 }
 0x971   : > { %3158 = vmatprep.mubr.f32.mxu1 %v4134_v45 }
 0x972   : > { %v4548_v45 = vrot.slane %v4150_v20, %v4609_v58 }
 0x974   : > { %3159 = vmatmul.mubr.f32.gmra.mrb[44].mxu1 %v4139_v31 }
 0x975   : > { %3161 = vmatprep.mubr.f32.mxu1 %v4142_v63 }
 0x978   : > { %3162 = vmatmul.mubr.f32.gmra.mrb[46].mxu1 %v4147_v1 }
 0xa2f   : > { %v3142_v31 = vpop.f32.mrb[32].mxu1 }
 0xa30   : > { %v2319_v63 = vadd.f32 %v3142_v31, %v4548_v45  ;;  %v2313_v1 = vpop.f32.mrb[33].mxu1 }
 0xa31   : > { %v2314_v27 = vadd.f32 %v2313_v1, %v4548_v45 }
 0xa32   : > { %v2393_v42 = vmax.f32 %v2319_v63, 0.0 }
 0xa33   : > { %v2392_v43 = vmax.f32 %v2314_v27, 0.0  ;;  %v3145_v61 = vpop.f32.mrb[34].mxu1 }
 0xa34   : > { %v2329_v5 = vadd.f32 %v3145_v61, %v4548_v45  ;;  %v2323_v19 = vpop.f32.mrb[35].mxu1  ;;  %v2409_v38 = vmin.f32 %v2393_v42, 10.0 }
 0xa35   : > { %v2324_v36 = vadd.f32 %v2323_v19, %v4548_v45  ;;  %v2408_v2 = vmin.f32 %v2392_v43, 10.0 }
 0xa36   : > { %v2395_v0 = vmax.f32 %v2329_v5, 0.0  ;;  %v2439_v23 = vsel %vm1091_vm3, %v2409_v38, 0.0 }
 0xa37   : > { %v2394_v56 = vmax.f32 %v2324_v36, 0.0  ;;  %v3148_v20 = vpop.f32.mrb[36].mxu1  ;;  %v2424_v10 = vsel %vm1091_vm3, %v2408_v2, 0.0 }
 0xa38   : > { %v2411_v51 = vmin.f32 %v2395_v0, 10.0  ;;  %v2339_v7 = vadd.f32 %v3148_v20, %v4548_v45  ;;  %v2333_v15 = vpop.f32.mrb[37].mxu1 }
 0xa39   : > { %v2410_v46 = vmin.f32 %v2394_v56, 10.0  ;;  %v2334_v24 = vadd.f32 %v2333_v15, %v4548_v45 }
 0xa3a   : > { %v2440_v30 = vsel %vm1091_vm3, %v2411_v51, 0.0  ;;  %v2397_v12 = vmax.f32 %v2339_v7, 0.0 }
 0xa3b   : > { %v2441_v11 = vadd.f32 %v2440_v30, %v2439_v23  ;;  %v2425_v37 = vsel %vm1091_vm3, %v2410_v46, 0.0  ;;  %v2396_v33 = vmax.f32 %v2334_v24, 0.0  ;;  %v3151_v40 = vpop.f32.mrb[38].mxu1 }
 0xa3c   : > { %v2426_v35 = vadd.f32 %v2425_v37, %v2424_v10  ;;  %v2413_v34 = vmin.f32 %v2397_v12, 10.0  ;;  %v2349_v13 = vadd.f32 %v3151_v40, %v4548_v45  ;;  %v2343_v26 = vpop.f32.mrb[39].mxu1 }
 0xa3d   : > { %v2412_v6 = vmin.f32 %v2396_v33, 10.0  ;;  %v2344_v28 = vadd.f32 %v2343_v26, %v4548_v45 }
 0xa3e   : > { %v2442_v3 = vsel %vm1091_vm3, %v2413_v34, 0.0  ;;  %v2399_v17 = vmax.f32 %v2349_v13, 0.0 }
 0xa3f   : > { %v2443_v4 = vadd.f32 %v2442_v3, %v2441_v11  ;;  %v2427_v60 = vsel %vm1091_vm3, %v2412_v6, 0.0  ;;  %v2398_v53 = vmax.f32 %v2344_v28, 0.0  ;;  %v3154_v48 = vpop.f32.mrb[40].mxu1 }
 0xa40   : > { %v2428_v49 = vadd.f32 %v2427_v60, %v2426_v35  ;;  %v2415_v21 = vmin.f32 %v2399_v17, 10.0  ;;  %v2359_v52 = vadd.f32 %v3154_v48, %v4548_v45  ;;  %v2353_v16 = vpop.f32.mrb[41].mxu1 }
 0xa41   : > { %v2414_v62 = vmin.f32 %v2398_v53, 10.0  ;;  %v2354_v8 = vadd.f32 %v2353_v16, %v4548_v45 }
 0xa42   : > { %v2444_v39 = vsel %vm1091_vm3, %v2415_v21, 0.0  ;;  %v2401_v22 = vmax.f32 %v2359_v52, 0.0 }
 0xa43   : > { %v2445_v25 = vadd.f32 %v2444_v39, %v2443_v4  ;;  %v2429_v44 = vsel %vm1091_vm3, %v2414_v62, 0.0  ;;  %v2400_v57 = vmax.f32 %v2354_v8, 0.0  ;;  %v3157_v54 = vpop.f32.mrb[42].mxu1 }
 0xa44   : > { %v2430_v47 = vadd.f32 %v2429_v44, %v2428_v49  ;;  %v2417_v32 = vmin.f32 %v2401_v22, 10.0  ;;  %v2369_v9 = vadd.f32 %v3157_v54, %v4548_v45  ;;  %v2363_v59 = vpop.f32.mrb[43].mxu1 }
 0xa45   : > { %v2416_v50 = vmin.f32 %v2400_v57, 10.0  ;;  %v2364_v41 = vadd.f32 %v2363_v59, %v4548_v45 }
 0xa46   : > { %v2446_v14 = vsel %vm1091_vm3, %v2417_v32, 0.0  ;;  %v2403_v18 = vmax.f32 %v2369_v9, 0.0 }
 0xa47   : > { %v2447_v29 = vadd.f32 %v2446_v14, %v2445_v25  ;;  %v2431_v55 = vsel %vm1091_vm3, %v2416_v50, 0.0  ;;  %v2402_v58 = vmax.f32 %v2364_v41, 0.0  ;;  %v3160_v31 = vpop.f32.mrb[44].mxu1 }
 0xa48   : > { %v2432_v63 = vadd.f32 %v2431_v55, %v2430_v47  ;;  %v2419_v1 = vmin.f32 %v2403_v18, 10.0  ;;  %v2379_v27 = vadd.f32 %v3160_v31, %v4548_v45  ;;  %v2373_v42 = vpop.f32.mrb[45].mxu1 }
 0xa49   : > { %v2418_v43 = vmin.f32 %v2402_v58, 10.0  ;;  %v2374_v61 = vadd.f32 %v2373_v42, %v4548_v45 }
 0xa4a   : > { %v2448_v5 = vsel %vm1091_vm3, %v2419_v1, 0.0  ;;  %v2405_v19 = vmax.f32 %v2379_v27, 0.0 }
 0xa4b   : > { %v2449_v36 = vadd.f32 %v2448_v5, %v2447_v29  ;;  %v2433_v38 = vsel %vm1091_vm3, %v2418_v43, 0.0  ;;  %v2404_v0 = vmax.f32 %v2374_v61, 0.0  ;;  %v3163_v2 = vpop.f32.mrb[46].mxu1 }
 0xa4c   : > { %v2434_v56 = vadd.f32 %v2433_v38, %v2432_v63  ;;  %v2421_v20 = vmin.f32 %v2405_v19, 10.0  ;;  %v2389_v51 = vadd.f32 %v3163_v2, %v4548_v45  ;;  %v2383_v7 = vpop.f32.mrb[47].mxu1 }
 0xa4d   : > { %v2420_v15 = vmin.f32 %v2404_v0, 10.0  ;;  %v2384_v46 = vadd.f32 %v2383_v7, %v4548_v45  ;;  %v2775_v45 = vld [vmem:[%s4603_s9] ss:$0 sm:$0xff] }
 0xa4e   : > { %v2450_v24 = vsel %vm1091_vm3, %v2421_v20, 0.0  ;;  %v2407_v23 = vmax.f32 %v2389_v51, 0.0 }
 0xa4f   : > { %v2451_v30 = vadd.f32 %v2450_v24, %v2449_v36  ;;  %v2435_v12 = vsel %vm1091_vm3, %v2420_v15, 0.0  ;;  %v2406_v10 = vmax.f32 %v2384_v46, 0.0 }
 0xa50   : > { %v2436_v11 = vadd.f32 %v2435_v12, %v2434_v56  ;;  %v2423_v37 = vmin.f32 %v2407_v23, 10.0 }
 0xa51   : > { %v2422_v33 = vmin.f32 %v2406_v10, 10.0 }
 0xa52   : > { %v2452_v40 = vsel %vm1091_vm3, %v2423_v37, 0.0 }
 0xa53   : > { %v2453_v35 = vadd.f32 %v2452_v40, %v2451_v30  ;;  %v2437_v34 = vsel %vm1091_vm3, %v2422_v33, 0.0 }
 0xa54   : > { %v2438_v13 = vadd.f32 %v2437_v34, %v2436_v11 }
 0xa55   : > { %v2455_v6 = vmul.f32 0.125, %v2453_v35 }
 0xa56   : > { %v2454_v26 = vmul.f32 0.125, %v2438_v13 }
 0xa58   : > { %3172 = vmatprep.mubr.msk.f32.mxu0 %vm1091_vm3, %v2454_v26 }
 0xa59   : > { %3173 = vmatmul.mubr.msk.f32.vlgmr.msra.gmra.mrb[48].mxu0 %vm1091_vm3, %v2455_v6 }
 0xb2c   : > { %v3174_v28 = vpop.f32.mrb[48].mxu0 }
 0xb2d   : > { %v2545_v3 = vadd.f32 %v3174_v28, %v2775_v45  ;;  %v2539_v17 = vpop.f32.mrb[49].mxu0 }
 0xb2e   : > { %v2540_v4 = vadd.f32 %v2775_v45, %v2539_v17 }
 0xb2f   : > { %2550 = vst.msk [vmem:[%s432_s29 + $0x8] sm:$0xff] %vm2548_vm4, %v2545_v3 }
 0xb30   : > { %2549 = vst.msk [vmem:[%s432_s29] sm:$0xff] %vm2548_vm4, %v2540_v4 }
 0xb31 PF: > { %s23_s13 = sadd.s32 1, %s3467_s13  }
 0xb32   : > { %p20_p2 = scmp.ge.s32.totalorder %s23_s13, 4  }
 0xb34   :  { %22 = sbr.rel (!%p20_p2) target bundleno = 3 (0x3), region = 110 }
 0xb3b   :  { %2572 = vsyncpa [#allocation3], 1 }
 0xb3c   :  { %2574 = vsyncpa [#allocation3 + $0x1], 1 }
 0xb3d   :  { %2575 = vsyncpa [#allocation5], 1 }
 0xb3e   :  { %2576 = vsyncpa [#allocation8], 1 }

</bundles_post_ra>
